<compile_context>
chip_gen: v5e
topology: v5e:2x2
jax: 0.10.0
libtpu: 0.0.40
codegen_flags: <defaults>
</compile_context>

<pallas_src>
import functools

import jax
import jax.numpy as jnp
from jax import lax
from jax.experimental import pallas as pl
from jax.experimental.pallas import tpu as pltpu


def _mha_block_kernel(x_ref, gamma_ref, beta_ref,
                      wq_ref, wk_ref, wv_ref,
                      bq_ref, bk_ref, bv_ref,
                      wo_ref, bo_ref,
                      o_ref,
                      *, num_heads, scale, skip_lam, eps):
    """One batch element: x_ref (1, N, C) -> o_ref (1, N, C)."""
    x = x_ref[0].astype(jnp.float32)                    # (N, C)

    # ---- LayerNorm(x * skip_lam), f32 ----
    xs = x * skip_lam
    mean = jnp.mean(xs, axis=-1, keepdims=True)
    centred = xs - mean
    var = jnp.mean(centred * centred, axis=-1, keepdims=True)
    y = centred * lax.rsqrt(var + eps)
    y = y * gamma_ref[...] + beta_ref[...]               # (N, C)

    # ---- Multi-head attention (static unroll over heads; 2-D matmuls only) ----
    out = jnp.zeros_like(x)                              # (N, C) f32 accumulator
    for h in range(num_heads):
        q = jnp.dot(y, wq_ref[h], preferred_element_type=jnp.float32) + bq_ref[h]
        k = jnp.dot(y, wk_ref[h], preferred_element_type=jnp.float32) + bk_ref[h]
        v = jnp.dot(y, wv_ref[h], preferred_element_type=jnp.float32) + bv_ref[h]

        # scores: (N, N), contraction over head_dim (no explicit transpose)
        s = jnp.einsum('nd,md->nm', q * scale, k,
                       preferred_element_type=jnp.float32)
        s = s - jnp.max(s, axis=-1, keepdims=True)
        p = jnp.exp(s)
        p = p / jnp.sum(p, axis=-1, keepdims=True)

        ctx = jnp.dot(p, v, preferred_element_type=jnp.float32)       # (N, Dh)
        # per-head slice of the proj weight folds the head-concat + proj matmul
        out = out + jnp.dot(ctx, wo_ref[h], preferred_element_type=jnp.float32)

    out = out + bo_ref[...]                               # proj bias

    # ---- residual:  x + attn(norm1(x*skip_lam)) / skip_lam ----
    o_ref[0] = (x + out * (1.0 / skip_lam)).astype(o_ref.dtype)


def _resident_spec(shape):
    """Full-array block, constant index_map -> stays resident across the grid."""
    ndim = len(shape)
    return pl.BlockSpec(shape, lambda b: (0,) * ndim)


def mha_block(x, gamma, beta, w_q, w_k, w_v, b_q, b_k, b_v, w_o, b_o,
              *, num_heads, skip_lam=1.0, qk_scale=None, eps=1e-5):
    """Pallas MHABlock forward.

    x:            (B, N, C)
    gamma, beta:  (C,)                 LayerNorm affine
    w_q/w_k/w_v:  (H, C, Dh)           per-head slices of qkv.weight.T
                                       (torch qkv.weight[j*H*Dh + h*Dh : ..., :].T)
    b_q/b_k/b_v:  (H, Dh)              per-head qkv bias (zeros if qkv_bias=False)
    w_o:          (H, Dh, C)           per-head slices of proj.weight.T
    b_o:          (C,)                 proj bias
    """
    B, N, C = x.shape
    H, C_w, Dh = w_q.shape
    assert H == num_heads and C_w == C
    scale = qk_scale if qk_scale is not None else Dh ** (-0.5)

    gamma2 = gamma.reshape(1, C)
    beta2 = beta.reshape(1, C)
    b_o2 = b_o.reshape(1, C)

    kernel = functools.partial(
        _mha_block_kernel,
        num_heads=H, scale=float(scale), skip_lam=float(skip_lam), eps=float(eps))

    return pl.pallas_call(
        kernel,
        out_shape=jax.ShapeDtypeStruct((B, N, C), x.dtype),
        grid=(B,),
        in_specs=[
            pl.BlockSpec((1, N, C), lambda b: (b, 0, 0)),     # x
            _resident_spec(gamma2.shape),
            _resident_spec(beta2.shape),
            _resident_spec(w_q.shape),
            _resident_spec(w_k.shape),
            _resident_spec(w_v.shape),
            _resident_spec(b_q.shape),
            _resident_spec(b_k.shape),
            _resident_spec(b_v.shape),
            _resident_spec(w_o.shape),
            _resident_spec(b_o2.shape),
        ],
        out_specs=pl.BlockSpec((1, N, C), lambda b: (b, 0, 0)),
        compiler_params=pltpu.CompilerParams(
            dimension_semantics=("parallel",)),               # megacore over batch
    )(x, gamma2, beta2, w_q, w_k, w_v, b_q, b_k, b_v, w_o, b_o2)


if __name__ == "__main__":
    # Small shapes consistent with the module: batch=2, seq=16, dim=32,
    # num_heads=4, head_dim=8, skip_lam=1.0 (module defaults: qkv_bias=False,
    # all drop rates 0.0 -> dropout/drop_path are identity).
    B, N = 2, 16
    dim, num_heads, head_dim = 32, 4, 8
    skip_lam = 1.0
    eps = 1e-5
    scale = head_dim ** (-0.5)

    key = jax.random.PRNGKey(0)
    ks = jax.random.split(key, 8)
    x = jax.random.normal(ks[0], (B, N, dim), jnp.float32)
    gamma = 1.0 + 0.1 * jax.random.normal(ks[1], (dim,), jnp.float32)
    beta = 0.1 * jax.random.normal(ks[2], (dim,), jnp.float32)
    w_q = 0.05 * jax.random.normal(ks[3], (num_heads, dim, head_dim), jnp.float32)
    w_k = 0.05 * jax.random.normal(ks[4], (num_heads, dim, head_dim), jnp.float32)
    w_v = 0.05 * jax.random.normal(ks[5], (num_heads, dim, head_dim), jnp.float32)
    b_q = jnp.zeros((num_heads, head_dim), jnp.float32)   # qkv_bias=False
    b_k = jnp.zeros((num_heads, head_dim), jnp.float32)
    b_v = jnp.zeros((num_heads, head_dim), jnp.float32)
    w_o = 0.05 * jax.random.normal(ks[6], (num_heads, head_dim, dim), jnp.float32)
    b_o = 0.05 * jax.random.normal(ks[7], (dim,), jnp.float32)

    out = mha_block(x, gamma, beta, w_q, w_k, w_v, b_q, b_k, b_v, w_o, b_o,
                    num_heads=num_heads, skip_lam=skip_lam, eps=eps)
    out = jax.block_until_ready(out)

    # ---- pure-JAX reference mirroring the torch forward ----
    hp = lax.Precision.HIGHEST
    xs = x * skip_lam
    mean = xs.mean(-1, keepdims=True)
    var = ((xs - mean) ** 2).mean(-1, keepdims=True)
    y = (xs - mean) / jnp.sqrt(var + eps) * gamma + beta
    q = jnp.einsum('bnc,hcd->bhnd', y, w_q, precision=hp) + b_q[None, :, None, :]
    k = jnp.einsum('bnc,hcd->bhnd', y, w_k, precision=hp) + b_k[None, :, None, :]
    v = jnp.einsum('bnc,hcd->bhnd', y, w_v, precision=hp) + b_v[None, :, None, :]
    attn = jax.nn.softmax(
        jnp.einsum('bhnd,bhmd->bhnm', q * scale, k, precision=hp), axis=-1)
    ctx = jnp.einsum('bhnm,bhmd->bhnd', attn, v, precision=hp)
    ref = x + (jnp.einsum('bhnd,hdc->bnc', ctx, w_o, precision=hp) + b_o) / skip_lam

    assert out.shape == (B, N, dim)
    err = float(jnp.max(jnp.abs(out - ref)))
    assert jnp.allclose(out, ref, atol=1e-3, rtol=1e-3), f"max abs err = {err}"

    print("KERNEL_OK")
</pallas_src>

<mosaic_0001>
module attributes {stable_mosaic.version = 11 : i64} {
  func.func @_mha_block_kernel(%arg0: i32, %arg1: memref<1x16x32xf32, #tpu.memory_space<vmem>>, %arg2: memref<1x32xf32, #tpu.memory_space<vmem>>, %arg3: memref<1x32xf32, #tpu.memory_space<vmem>>, %arg4: memref<4x32x8xf32, #tpu.memory_space<vmem>>, %arg5: memref<4x32x8xf32, #tpu.memory_space<vmem>>, %arg6: memref<4x32x8xf32, #tpu.memory_space<vmem>>, %arg7: memref<4x8xf32, #tpu.memory_space<vmem>>, %arg8: memref<4x8xf32, #tpu.memory_space<vmem>>, %arg9: memref<4x8xf32, #tpu.memory_space<vmem>>, %arg10: memref<4x8x32xf32, #tpu.memory_space<vmem>>, %arg11: memref<1x32xf32, #tpu.memory_space<vmem>>, %arg12: memref<1x16x32xf32, #tpu.memory_space<vmem>>) attributes {dimension_semantics = [#tpu.dimension_semantics<parallel>], iteration_bounds = array<i64: 2>, scalar_prefetch = 0 : i64, scratch_operands = 0 : i64, tpu.core_type = #tpu.core_type<tc>, window_params = [{transform_indices = @transform_0, window_bounds = array<i64: 1, 16, 32>}, {pipeline_mode = #tpu.pipeline_mode<synchronous>, transform_indices = @transform_1, window_bounds = array<i64: 1, 32>}, {pipeline_mode = #tpu.pipeline_mode<synchronous>, transform_indices = @transform_2, window_bounds = array<i64: 1, 32>}, {pipeline_mode = #tpu.pipeline_mode<synchronous>, transform_indices = @transform_3, window_bounds = array<i64: 4, 32, 8>}, {pipeline_mode = #tpu.pipeline_mode<synchronous>, transform_indices = @transform_4, window_bounds = array<i64: 4, 32, 8>}, {pipeline_mode = #tpu.pipeline_mode<synchronous>, transform_indices = @transform_5, window_bounds = array<i64: 4, 32, 8>}, {pipeline_mode = #tpu.pipeline_mode<synchronous>, transform_indices = @transform_6, window_bounds = array<i64: 4, 8>}, {pipeline_mode = #tpu.pipeline_mode<synchronous>, transform_indices = @transform_7, window_bounds = array<i64: 4, 8>}, {pipeline_mode = #tpu.pipeline_mode<synchronous>, transform_indices = @transform_8, window_bounds = array<i64: 4, 8>}, {pipeline_mode = #tpu.pipeline_mode<synchronous>, transform_indices = @transform_9, window_bounds = array<i64: 4, 8, 32>}, {pipeline_mode = #tpu.pipeline_mode<synchronous>, transform_indices = @transform_10, window_bounds = array<i64: 1, 32>}, {transform_indices = @transform_11, window_bounds = array<i64: 1, 16, 32>}]} {
    %c0 = arith.constant 0 : index
    %c0_0 = arith.constant 0 : index
    %c0_1 = arith.constant 0 : index
    %0 = vector.load %arg1[%c0, %c0_0, %c0_1] : memref<1x16x32xf32, #tpu.memory_space<vmem>>, vector<1x16x32xf32>
    %1 = vector.shape_cast %0 : vector<1x16x32xf32> to vector<16x32xf32>
    %cst = arith.constant 1.000000e+00 : f32
    %2 = vector.broadcast %cst : f32 to vector<16x32xf32>
    %3 = arith.mulf %1, %2 : vector<16x32xf32>
    %cst_2 = arith.constant dense<0.000000e+00> : vector<16xf32>
    %4 = vector.multi_reduction <add>, %3, %cst_2 [1] : vector<16x32xf32> to vector<16xf32>
    %5 = vector.shape_cast %4 : vector<16xf32> to vector<16x1xf32>
    %cst_3 = arith.constant 3.200000e+01 : f32
    %6 = vector.broadcast %cst_3 : f32 to vector<16x1xf32>
    %7 = arith.divf %5, %6 : vector<16x1xf32>
    %8 = vector.broadcast %7 : vector<16x1xf32> to vector<16x32xf32>
    %9 = arith.subf %3, %8 : vector<16x32xf32>
    %10 = arith.mulf %9, %9 : vector<16x32xf32>
    %cst_4 = arith.constant dense<0.000000e+00> : vector<16xf32>
    %11 = vector.multi_reduction <add>, %10, %cst_4 [1] : vector<16x32xf32> to vector<16xf32>
    %12 = vector.shape_cast %11 : vector<16xf32> to vector<16x1xf32>
    %cst_5 = arith.constant 3.200000e+01 : f32
    %13 = vector.broadcast %cst_5 : f32 to vector<16x1xf32>
    %14 = arith.divf %12, %13 : vector<16x1xf32>
    %cst_6 = arith.constant 9.99999974E-6 : f32
    %15 = vector.broadcast %cst_6 : f32 to vector<16x1xf32>
    %16 = arith.addf %14, %15 : vector<16x1xf32>
    %17 = math.rsqrt %16 : vector<16x1xf32>
    %18 = vector.broadcast %17 : vector<16x1xf32> to vector<16x32xf32>
    %19 = arith.mulf %9, %18 : vector<16x32xf32>
    %c0_7 = arith.constant 0 : index
    %c0_8 = arith.constant 0 : index
    %20 = vector.load %arg2[%c0_7, %c0_8] : memref<1x32xf32, #tpu.memory_space<vmem>>, vector<1x32xf32>
    %21 = vector.broadcast %20 : vector<1x32xf32> to vector<16x32xf32>
    %22 = arith.mulf %19, %21 : vector<16x32xf32>
    %c0_9 = arith.constant 0 : index
    %c0_10 = arith.constant 0 : index
    %23 = vector.load %arg3[%c0_9, %c0_10] : memref<1x32xf32, #tpu.memory_space<vmem>>, vector<1x32xf32>
    %24 = vector.broadcast %23 : vector<1x32xf32> to vector<16x32xf32>
    %25 = arith.addf %22, %24 : vector<16x32xf32>
    %cst_11 = arith.constant 0.000000e+00 : f32
    %26 = vector.broadcast %cst_11 : f32 to vector<16x32xf32>
    %c0_12 = arith.constant 0 : index
    %c0_13 = arith.constant 0 : index
    %c0_14 = arith.constant 0 : index
    %27 = vector.load %arg4[%c0_12, %c0_13, %c0_14] : memref<4x32x8xf32, #tpu.memory_space<vmem>>, vector<1x32x8xf32>
    %28 = vector.shape_cast %27 : vector<1x32x8xf32> to vector<32x8xf32>
    %cst_15 = arith.constant dense<0.000000e+00> : vector<16x8xf32>
    %29 = tpu.matmul %25, %28, %cst_15 {dimension_numbers = #tpu.dot_dimension_numbers<[1], [0], [0], [1], [0, 0, 1, 1], [], []>} : vector<16x32xf32>, vector<32x8xf32>, vector<16x8xf32> -> vector<16x8xf32>
    %c0_16 = arith.constant 0 : index
    %c0_17 = arith.constant 0 : index
    %30 = vector.load %arg7[%c0_16, %c0_17] : memref<4x8xf32, #tpu.memory_space<vmem>>, vector<1x8xf32>
    %31 = vector.shape_cast %30 : vector<1x8xf32> to vector<8xf32>
    %32 = vector.shape_cast %31 : vector<8xf32> to vector<1x8xf32>
    %33 = vector.broadcast %32 : vector<1x8xf32> to vector<16x8xf32>
    %34 = arith.addf %29, %33 : vector<16x8xf32>
    %c0_18 = arith.constant 0 : index
    %c0_19 = arith.constant 0 : index
    %c0_20 = arith.constant 0 : index
    %35 = vector.load %arg5[%c0_18, %c0_19, %c0_20] : memref<4x32x8xf32, #tpu.memory_space<vmem>>, vector<1x32x8xf32>
    %36 = vector.shape_cast %35 : vector<1x32x8xf32> to vector<32x8xf32>
    %cst_21 = arith.constant dense<0.000000e+00> : vector<16x8xf32>
    %37 = tpu.matmul %25, %36, %cst_21 {dimension_numbers = #tpu.dot_dimension_numbers<[1], [0], [0], [1], [0, 0, 1, 1], [], []>} : vector<16x32xf32>, vector<32x8xf32>, vector<16x8xf32> -> vector<16x8xf32>
    %c0_22 = arith.constant 0 : index
    %c0_23 = arith.constant 0 : index
    %38 = vector.load %arg8[%c0_22, %c0_23] : memref<4x8xf32, #tpu.memory_space<vmem>>, vector<1x8xf32>
    %39 = vector.shape_cast %38 : vector<1x8xf32> to vector<8xf32>
    %40 = vector.shape_cast %39 : vector<8xf32> to vector<1x8xf32>
    %41 = vector.broadcast %40 : vector<1x8xf32> to vector<16x8xf32>
    %42 = arith.addf %37, %41 : vector<16x8xf32>
    %c0_24 = arith.constant 0 : index
    %c0_25 = arith.constant 0 : index
    %c0_26 = arith.constant 0 : index
    %43 = vector.load %arg6[%c0_24, %c0_25, %c0_26] : memref<4x32x8xf32, #tpu.memory_space<vmem>>, vector<1x32x8xf32>
    %44 = vector.shape_cast %43 : vector<1x32x8xf32> to vector<32x8xf32>
    %cst_27 = arith.constant dense<0.000000e+00> : vector<16x8xf32>
    %45 = tpu.matmul %25, %44, %cst_27 {dimension_numbers = #tpu.dot_dimension_numbers<[1], [0], [0], [1], [0, 0, 1, 1], [], []>} : vector<16x32xf32>, vector<32x8xf32>, vector<16x8xf32> -> vector<16x8xf32>
    %c0_28 = arith.constant 0 : index
    %c0_29 = arith.constant 0 : index
    %46 = vector.load %arg9[%c0_28, %c0_29] : memref<4x8xf32, #tpu.memory_space<vmem>>, vector<1x8xf32>
    %47 = vector.shape_cast %46 : vector<1x8xf32> to vector<8xf32>
    %48 = vector.shape_cast %47 : vector<8xf32> to vector<1x8xf32>
    %49 = vector.broadcast %48 : vector<1x8xf32> to vector<16x8xf32>
    %50 = arith.addf %45, %49 : vector<16x8xf32>
    %cst_30 = arith.constant 0.353553385 : f32
    %51 = vector.broadcast %cst_30 : f32 to vector<16x8xf32>
    %52 = arith.mulf %34, %51 : vector<16x8xf32>
    "tpu.trace_start"() <{level = 10 : i32, message = "nd,md->nm"}> : () -> ()
    %cst_31 = arith.constant dense<0.000000e+00> : vector<16x16xf32>
    %53 = tpu.matmul %52, %42, %cst_31 {dimension_numbers = #tpu.dot_dimension_numbers<[1], [1], [0], [0], [0, 0, 1, 0], [], []>} : vector<16x8xf32>, vector<16x8xf32>, vector<16x16xf32> -> vector<16x16xf32>
    "tpu.trace_stop"() : () -> ()
    %cst_32 = arith.constant dense<0xFF800000> : vector<16xf32>
    %54 = vector.multi_reduction <maximumf>, %53, %cst_32 [1] : vector<16x16xf32> to vector<16xf32>
    %55 = vector.shape_cast %54 : vector<16xf32> to vector<16x1xf32>
    %56 = vector.broadcast %55 : vector<16x1xf32> to vector<16x16xf32>
    %57 = arith.subf %53, %56 : vector<16x16xf32>
    %58 = math.exp %57 : vector<16x16xf32>
    %cst_33 = arith.constant dense<0.000000e+00> : vector<16xf32>
    %59 = vector.multi_reduction <add>, %58, %cst_33 [1] : vector<16x16xf32> to vector<16xf32>
    %60 = vector.shape_cast %59 : vector<16xf32> to vector<16x1xf32>
    %61 = vector.broadcast %60 : vector<16x1xf32> to vector<16x16xf32>
    %62 = arith.divf %58, %61 : vector<16x16xf32>
    %cst_34 = arith.constant dense<0.000000e+00> : vector<16x8xf32>
    %63 = tpu.matmul %62, %50, %cst_34 {dimension_numbers = #tpu.dot_dimension_numbers<[1], [0], [0], [1], [0, 0, 1, 1], [], []>} : vector<16x16xf32>, vector<16x8xf32>, vector<16x8xf32> -> vector<16x8xf32>
    %c0_35 = arith.constant 0 : index
    %c0_36 = arith.constant 0 : index
    %c0_37 = arith.constant 0 : index
    %64 = vector.load %arg10[%c0_35, %c0_36, %c0_37] : memref<4x8x32xf32, #tpu.memory_space<vmem>>, vector<1x8x32xf32>
    %65 = vector.shape_cast %64 : vector<1x8x32xf32> to vector<8x32xf32>
    %cst_38 = arith.constant dense<0.000000e+00> : vector<16x32xf32>
    %66 = tpu.matmul %63, %65, %cst_38 {dimension_numbers = #tpu.dot_dimension_numbers<[1], [0], [0], [1], [0, 0, 1, 1], [], []>} : vector<16x8xf32>, vector<8x32xf32>, vector<16x32xf32> -> vector<16x32xf32>
    %67 = arith.addf %26, %66 : vector<16x32xf32>
    %c1 = arith.constant 1 : index
    %c0_39 = arith.constant 0 : index
    %c0_40 = arith.constant 0 : index
    %68 = vector.load %arg4[%c1, %c0_39, %c0_40] : memref<4x32x8xf32, #tpu.memory_space<vmem>>, vector<1x32x8xf32>
    %69 = vector.shape_cast %68 : vector<1x32x8xf32> to vector<32x8xf32>
    %cst_41 = arith.constant dense<0.000000e+00> : vector<16x8xf32>
    %70 = tpu.matmul %25, %69, %cst_41 {dimension_numbers = #tpu.dot_dimension_numbers<[1], [0], [0], [1], [0, 0, 1, 1], [], []>} : vector<16x32xf32>, vector<32x8xf32>, vector<16x8xf32> -> vector<16x8xf32>
    %c1_42 = arith.constant 1 : index
    %c0_43 = arith.constant 0 : index
    %71 = vector.load %arg7[%c1_42, %c0_43] : memref<4x8xf32, #tpu.memory_space<vmem>>, vector<1x8xf32>
    %72 = vector.shape_cast %71 : vector<1x8xf32> to vector<8xf32>
    %73 = vector.shape_cast %72 : vector<8xf32> to vector<1x8xf32>
    %74 = vector.broadcast %73 : vector<1x8xf32> to vector<16x8xf32>
    %75 = arith.addf %70, %74 : vector<16x8xf32>
    %c1_44 = arith.constant 1 : index
    %c0_45 = arith.constant 0 : index
    %c0_46 = arith.constant 0 : index
    %76 = vector.load %arg5[%c1_44, %c0_45, %c0_46] : memref<4x32x8xf32, #tpu.memory_space<vmem>>, vector<1x32x8xf32>
    %77 = vector.shape_cast %76 : vector<1x32x8xf32> to vector<32x8xf32>
    %cst_47 = arith.constant dense<0.000000e+00> : vector<16x8xf32>
    %78 = tpu.matmul %25, %77, %cst_47 {dimension_numbers = #tpu.dot_dimension_numbers<[1], [0], [0], [1], [0, 0, 1, 1], [], []>} : vector<16x32xf32>, vector<32x8xf32>, vector<16x8xf32> -> vector<16x8xf32>
    %c1_48 = arith.constant 1 : index
    %c0_49 = arith.constant 0 : index
    %79 = vector.load %arg8[%c1_48, %c0_49] : memref<4x8xf32, #tpu.memory_space<vmem>>, vector<1x8xf32>
    %80 = vector.shape_cast %79 : vector<1x8xf32> to vector<8xf32>
    %81 = vector.shape_cast %80 : vector<8xf32> to vector<1x8xf32>
    %82 = vector.broadcast %81 : vector<1x8xf32> to vector<16x8xf32>
    %83 = arith.addf %78, %82 : vector<16x8xf32>
    %c1_50 = arith.constant 1 : index
    %c0_51 = arith.constant 0 : index
    %c0_52 = arith.constant 0 : index
    %84 = vector.load %arg6[%c1_50, %c0_51, %c0_52] : memref<4x32x8xf32, #tpu.memory_space<vmem>>, vector<1x32x8xf32>
    %85 = vector.shape_cast %84 : vector<1x32x8xf32> to vector<32x8xf32>
    %cst_53 = arith.constant dense<0.000000e+00> : vector<16x8xf32>
    %86 = tpu.matmul %25, %85, %cst_53 {dimension_numbers = #tpu.dot_dimension_numbers<[1], [0], [0], [1], [0, 0, 1, 1], [], []>} : vector<16x32xf32>, vector<32x8xf32>, vector<16x8xf32> -> vector<16x8xf32>
    %c1_54 = arith.constant 1 : index
    %c0_55 = arith.constant 0 : index
    %87 = vector.load %arg9[%c1_54, %c0_55] : memref<4x8xf32, #tpu.memory_space<vmem>>, vector<1x8xf32>
    %88 = vector.shape_cast %87 : vector<1x8xf32> to vector<8xf32>
    %89 = vector.shape_cast %88 : vector<8xf32> to vector<1x8xf32>
    %90 = vector.broadcast %89 : vector<1x8xf32> to vector<16x8xf32>
    %91 = arith.addf %86, %90 : vector<16x8xf32>
    %cst_56 = arith.constant 0.353553385 : f32
    %92 = vector.broadcast %cst_56 : f32 to vector<16x8xf32>
    %93 = arith.mulf %75, %92 : vector<16x8xf32>
    "tpu.trace_start"() <{level = 10 : i32, message = "nd,md->nm"}> : () -> ()
    %cst_57 = arith.constant dense<0.000000e+00> : vector<16x16xf32>
    %94 = tpu.matmul %93, %83, %cst_57 {dimension_numbers = #tpu.dot_dimension_numbers<[1], [1], [0], [0], [0, 0, 1, 0], [], []>} : vector<16x8xf32>, vector<16x8xf32>, vector<16x16xf32> -> vector<16x16xf32>
    "tpu.trace_stop"() : () -> ()
    %cst_58 = arith.constant dense<0xFF800000> : vector<16xf32>
    %95 = vector.multi_reduction <maximumf>, %94, %cst_58 [1] : vector<16x16xf32> to vector<16xf32>
    %96 = vector.shape_cast %95 : vector<16xf32> to vector<16x1xf32>
    %97 = vector.broadcast %96 : vector<16x1xf32> to vector<16x16xf32>
    %98 = arith.subf %94, %97 : vector<16x16xf32>
    %99 = math.exp %98 : vector<16x16xf32>
    %cst_59 = arith.constant dense<0.000000e+00> : vector<16xf32>
    %100 = vector.multi_reduction <add>, %99, %cst_59 [1] : vector<16x16xf32> to vector<16xf32>
    %101 = vector.shape_cast %100 : vector<16xf32> to vector<16x1xf32>
    %102 = vector.broadcast %101 : vector<16x1xf32> to vector<16x16xf32>
    %103 = arith.divf %99, %102 : vector<16x16xf32>
    %cst_60 = arith.constant dense<0.000000e+00> : vector<16x8xf32>
    %104 = tpu.matmul %103, %91, %cst_60 {dimension_numbers = #tpu.dot_dimension_numbers<[1], [0], [0], [1], [0, 0, 1, 1], [], []>} : vector<16x16xf32>, vector<16x8xf32>, vector<16x8xf32> -> vector<16x8xf32>
    %c1_61 = arith.constant 1 : index
    %c0_62 = arith.constant 0 : index
    %c0_63 = arith.constant 0 : index
    %105 = vector.load %arg10[%c1_61, %c0_62, %c0_63] : memref<4x8x32xf32, #tpu.memory_space<vmem>>, vector<1x8x32xf32>
    %106 = vector.shape_cast %105 : vector<1x8x32xf32> to vector<8x32xf32>
    %cst_64 = arith.constant dense<0.000000e+00> : vector<16x32xf32>
    %107 = tpu.matmul %104, %106, %cst_64 {dimension_numbers = #tpu.dot_dimension_numbers<[1], [0], [0], [1], [0, 0, 1, 1], [], []>} : vector<16x8xf32>, vector<8x32xf32>, vector<16x32xf32> -> vector<16x32xf32>
    %108 = arith.addf %67, %107 : vector<16x32xf32>
    %c2 = arith.constant 2 : index
    %c0_65 = arith.constant 0 : index
    %c0_66 = arith.constant 0 : index
    %109 = vector.load %arg4[%c2, %c0_65, %c0_66] : memref<4x32x8xf32, #tpu.memory_space<vmem>>, vector<1x32x8xf32>
    %110 = vector.shape_cast %109 : vector<1x32x8xf32> to vector<32x8xf32>
    %cst_67 = arith.constant dense<0.000000e+00> : vector<16x8xf32>
    %111 = tpu.matmul %25, %110, %cst_67 {dimension_numbers = #tpu.dot_dimension_numbers<[1], [0], [0], [1], [0, 0, 1, 1], [], []>} : vector<16x32xf32>, vector<32x8xf32>, vector<16x8xf32> -> vector<16x8xf32>
    %c2_68 = arith.constant 2 : index
    %c0_69 = arith.constant 0 : index
    %112 = vector.load %arg7[%c2_68, %c0_69] : memref<4x8xf32, #tpu.memory_space<vmem>>, vector<1x8xf32>
    %113 = vector.shape_cast %112 : vector<1x8xf32> to vector<8xf32>
    %114 = vector.shape_cast %113 : vector<8xf32> to vector<1x8xf32>
    %115 = vector.broadcast %114 : vector<1x8xf32> to vector<16x8xf32>
    %116 = arith.addf %111, %115 : vector<16x8xf32>
    %c2_70 = arith.constant 2 : index
    %c0_71 = arith.constant 0 : index
    %c0_72 = arith.constant 0 : index
    %117 = vector.load %arg5[%c2_70, %c0_71, %c0_72] : memref<4x32x8xf32, #tpu.memory_space<vmem>>, vector<1x32x8xf32>
    %118 = vector.shape_cast %117 : vector<1x32x8xf32> to vector<32x8xf32>
    %cst_73 = arith.constant dense<0.000000e+00> : vector<16x8xf32>
    %119 = tpu.matmul %25, %118, %cst_73 {dimension_numbers = #tpu.dot_dimension_numbers<[1], [0], [0], [1], [0, 0, 1, 1], [], []>} : vector<16x32xf32>, vector<32x8xf32>, vector<16x8xf32> -> vector<16x8xf32>
    %c2_74 = arith.constant 2 : index
    %c0_75 = arith.constant 0 : index
    %120 = vector.load %arg8[%c2_74, %c0_75] : memref<4x8xf32, #tpu.memory_space<vmem>>, vector<1x8xf32>
    %121 = vector.shape_cast %120 : vector<1x8xf32> to vector<8xf32>
    %122 = vector.shape_cast %121 : vector<8xf32> to vector<1x8xf32>
    %123 = vector.broadcast %122 : vector<1x8xf32> to vector<16x8xf32>
    %124 = arith.addf %119, %123 : vector<16x8xf32>
    %c2_76 = arith.constant 2 : index
    %c0_77 = arith.constant 0 : index
    %c0_78 = arith.constant 0 : index
    %125 = vector.load %arg6[%c2_76, %c0_77, %c0_78] : memref<4x32x8xf32, #tpu.memory_space<vmem>>, vector<1x32x8xf32>
    %126 = vector.shape_cast %125 : vector<1x32x8xf32> to vector<32x8xf32>
    %cst_79 = arith.constant dense<0.000000e+00> : vector<16x8xf32>
    %127 = tpu.matmul %25, %126, %cst_79 {dimension_numbers = #tpu.dot_dimension_numbers<[1], [0], [0], [1], [0, 0, 1, 1], [], []>} : vector<16x32xf32>, vector<32x8xf32>, vector<16x8xf32> -> vector<16x8xf32>
    %c2_80 = arith.constant 2 : index
    %c0_81 = arith.constant 0 : index
    %128 = vector.load %arg9[%c2_80, %c0_81] : memref<4x8xf32, #tpu.memory_space<vmem>>, vector<1x8xf32>
    %129 = vector.shape_cast %128 : vector<1x8xf32> to vector<8xf32>
    %130 = vector.shape_cast %129 : vector<8xf32> to vector<1x8xf32>
    %131 = vector.broadcast %130 : vector<1x8xf32> to vector<16x8xf32>
    %132 = arith.addf %127, %131 : vector<16x8xf32>
    %cst_82 = arith.constant 0.353553385 : f32
    %133 = vector.broadcast %cst_82 : f32 to vector<16x8xf32>
    %134 = arith.mulf %116, %133 : vector<16x8xf32>
    "tpu.trace_start"() <{level = 10 : i32, message = "nd,md->nm"}> : () -> ()
    %cst_83 = arith.constant dense<0.000000e+00> : vector<16x16xf32>
    %135 = tpu.matmul %134, %124, %cst_83 {dimension_numbers = #tpu.dot_dimension_numbers<[1], [1], [0], [0], [0, 0, 1, 0], [], []>} : vector<16x8xf32>, vector<16x8xf32>, vector<16x16xf32> -> vector<16x16xf32>
    "tpu.trace_stop"() : () -> ()
    %cst_84 = arith.constant dense<0xFF800000> : vector<16xf32>
    %136 = vector.multi_reduction <maximumf>, %135, %cst_84 [1] : vector<16x16xf32> to vector<16xf32>
    %137 = vector.shape_cast %136 : vector<16xf32> to vector<16x1xf32>
    %138 = vector.broadcast %137 : vector<16x1xf32> to vector<16x16xf32>
    %139 = arith.subf %135, %138 : vector<16x16xf32>
    %140 = math.exp %139 : vector<16x16xf32>
    %cst_85 = arith.constant dense<0.000000e+00> : vector<16xf32>
    %141 = vector.multi_reduction <add>, %140, %cst_85 [1] : vector<16x16xf32> to vector<16xf32>
    %142 = vector.shape_cast %141 : vector<16xf32> to vector<16x1xf32>
    %143 = vector.broadcast %142 : vector<16x1xf32> to vector<16x16xf32>
    %144 = arith.divf %140, %143 : vector<16x16xf32>
    %cst_86 = arith.constant dense<0.000000e+00> : vector<16x8xf32>
    %145 = tpu.matmul %144, %132, %cst_86 {dimension_numbers = #tpu.dot_dimension_numbers<[1], [0], [0], [1], [0, 0, 1, 1], [], []>} : vector<16x16xf32>, vector<16x8xf32>, vector<16x8xf32> -> vector<16x8xf32>
    %c2_87 = arith.constant 2 : index
    %c0_88 = arith.constant 0 : index
    %c0_89 = arith.constant 0 : index
    %146 = vector.load %arg10[%c2_87, %c0_88, %c0_89] : memref<4x8x32xf32, #tpu.memory_space<vmem>>, vector<1x8x32xf32>
    %147 = vector.shape_cast %146 : vector<1x8x32xf32> to vector<8x32xf32>
    %cst_90 = arith.constant dense<0.000000e+00> : vector<16x32xf32>
    %148 = tpu.matmul %145, %147, %cst_90 {dimension_numbers = #tpu.dot_dimension_numbers<[1], [0], [0], [1], [0, 0, 1, 1], [], []>} : vector<16x8xf32>, vector<8x32xf32>, vector<16x32xf32> -> vector<16x32xf32>
    %149 = arith.addf %108, %148 : vector<16x32xf32>
    %c3 = arith.constant 3 : index
    %c0_91 = arith.constant 0 : index
    %c0_92 = arith.constant 0 : index
    %150 = vector.load %arg4[%c3, %c0_91, %c0_92] : memref<4x32x8xf32, #tpu.memory_space<vmem>>, vector<1x32x8xf32>
    %151 = vector.shape_cast %150 : vector<1x32x8xf32> to vector<32x8xf32>
    %cst_93 = arith.constant dense<0.000000e+00> : vector<16x8xf32>
    %152 = tpu.matmul %25, %151, %cst_93 {dimension_numbers = #tpu.dot_dimension_numbers<[1], [0], [0], [1], [0, 0, 1, 1], [], []>} : vector<16x32xf32>, vector<32x8xf32>, vector<16x8xf32> -> vector<16x8xf32>
    %c3_94 = arith.constant 3 : index
    %c0_95 = arith.constant 0 : index
    %153 = vector.load %arg7[%c3_94, %c0_95] : memref<4x8xf32, #tpu.memory_space<vmem>>, vector<1x8xf32>
    %154 = vector.shape_cast %153 : vector<1x8xf32> to vector<8xf32>
    %155 = vector.shape_cast %154 : vector<8xf32> to vector<1x8xf32>
    %156 = vector.broadcast %155 : vector<1x8xf32> to vector<16x8xf32>
    %157 = arith.addf %152, %156 : vector<16x8xf32>
    %c3_96 = arith.constant 3 : index
    %c0_97 = arith.constant 0 : index
    %c0_98 = arith.constant 0 : index
    %158 = vector.load %arg5[%c3_96, %c0_97, %c0_98] : memref<4x32x8xf32, #tpu.memory_space<vmem>>, vector<1x32x8xf32>
    %159 = vector.shape_cast %158 : vector<1x32x8xf32> to vector<32x8xf32>
    %cst_99 = arith.constant dense<0.000000e+00> : vector<16x8xf32>
    %160 = tpu.matmul %25, %159, %cst_99 {dimension_numbers = #tpu.dot_dimension_numbers<[1], [0], [0], [1], [0, 0, 1, 1], [], []>} : vector<16x32xf32>, vector<32x8xf32>, vector<16x8xf32> -> vector<16x8xf32>
    %c3_100 = arith.constant 3 : index
    %c0_101 = arith.constant 0 : index
    %161 = vector.load %arg8[%c3_100, %c0_101] : memref<4x8xf32, #tpu.memory_space<vmem>>, vector<1x8xf32>
    %162 = vector.shape_cast %161 : vector<1x8xf32> to vector<8xf32>
    %163 = vector.shape_cast %162 : vector<8xf32> to vector<1x8xf32>
    %164 = vector.broadcast %163 : vector<1x8xf32> to vector<16x8xf32>
    %165 = arith.addf %160, %164 : vector<16x8xf32>
    %c3_102 = arith.constant 3 : index
    %c0_103 = arith.constant 0 : index
    %c0_104 = arith.constant 0 : index
    %166 = vector.load %arg6[%c3_102, %c0_103, %c0_104] : memref<4x32x8xf32, #tpu.memory_space<vmem>>, vector<1x32x8xf32>
    %167 = vector.shape_cast %166 : vector<1x32x8xf32> to vector<32x8xf32>
    %cst_105 = arith.constant dense<0.000000e+00> : vector<16x8xf32>
    %168 = tpu.matmul %25, %167, %cst_105 {dimension_numbers = #tpu.dot_dimension_numbers<[1], [0], [0], [1], [0, 0, 1, 1], [], []>} : vector<16x32xf32>, vector<32x8xf32>, vector<16x8xf32> -> vector<16x8xf32>
    %c3_106 = arith.constant 3 : index
    %c0_107 = arith.constant 0 : index
    %169 = vector.load %arg9[%c3_106, %c0_107] : memref<4x8xf32, #tpu.memory_space<vmem>>, vector<1x8xf32>
    %170 = vector.shape_cast %169 : vector<1x8xf32> to vector<8xf32>
    %171 = vector.shape_cast %170 : vector<8xf32> to vector<1x8xf32>
    %172 = vector.broadcast %171 : vector<1x8xf32> to vector<16x8xf32>
    %173 = arith.addf %168, %172 : vector<16x8xf32>
    %cst_108 = arith.constant 0.353553385 : f32
    %174 = vector.broadcast %cst_108 : f32 to vector<16x8xf32>
    %175 = arith.mulf %157, %174 : vector<16x8xf32>
    "tpu.trace_start"() <{level = 10 : i32, message = "nd,md->nm"}> : () -> ()
    %cst_109 = arith.constant dense<0.000000e+00> : vector<16x16xf32>
    %176 = tpu.matmul %175, %165, %cst_109 {dimension_numbers = #tpu.dot_dimension_numbers<[1], [1], [0], [0], [0, 0, 1, 0], [], []>} : vector<16x8xf32>, vector<16x8xf32>, vector<16x16xf32> -> vector<16x16xf32>
    "tpu.trace_stop"() : () -> ()
    %cst_110 = arith.constant dense<0xFF800000> : vector<16xf32>
    %177 = vector.multi_reduction <maximumf>, %176, %cst_110 [1] : vector<16x16xf32> to vector<16xf32>
    %178 = vector.shape_cast %177 : vector<16xf32> to vector<16x1xf32>
    %179 = vector.broadcast %178 : vector<16x1xf32> to vector<16x16xf32>
    %180 = arith.subf %176, %179 : vector<16x16xf32>
    %181 = math.exp %180 : vector<16x16xf32>
    %cst_111 = arith.constant dense<0.000000e+00> : vector<16xf32>
    %182 = vector.multi_reduction <add>, %181, %cst_111 [1] : vector<16x16xf32> to vector<16xf32>
    %183 = vector.shape_cast %182 : vector<16xf32> to vector<16x1xf32>
    %184 = vector.broadcast %183 : vector<16x1xf32> to vector<16x16xf32>
    %185 = arith.divf %181, %184 : vector<16x16xf32>
    %cst_112 = arith.constant dense<0.000000e+00> : vector<16x8xf32>
    %186 = tpu.matmul %185, %173, %cst_112 {dimension_numbers = #tpu.dot_dimension_numbers<[1], [0], [0], [1], [0, 0, 1, 1], [], []>} : vector<16x16xf32>, vector<16x8xf32>, vector<16x8xf32> -> vector<16x8xf32>
    %c3_113 = arith.constant 3 : index
    %c0_114 = arith.constant 0 : index
    %c0_115 = arith.constant 0 : index
    %187 = vector.load %arg10[%c3_113, %c0_114, %c0_115] : memref<4x8x32xf32, #tpu.memory_space<vmem>>, vector<1x8x32xf32>
    %188 = vector.shape_cast %187 : vector<1x8x32xf32> to vector<8x32xf32>
    %cst_116 = arith.constant dense<0.000000e+00> : vector<16x32xf32>
    %189 = tpu.matmul %186, %188, %cst_116 {dimension_numbers = #tpu.dot_dimension_numbers<[1], [0], [0], [1], [0, 0, 1, 1], [], []>} : vector<16x8xf32>, vector<8x32xf32>, vector<16x32xf32> -> vector<16x32xf32>
    %190 = arith.addf %149, %189 : vector<16x32xf32>
    %c0_117 = arith.constant 0 : index
    %c0_118 = arith.constant 0 : index
    %191 = vector.load %arg11[%c0_117, %c0_118] : memref<1x32xf32, #tpu.memory_space<vmem>>, vector<1x32xf32>
    %192 = vector.broadcast %191 : vector<1x32xf32> to vector<16x32xf32>
    %193 = arith.addf %190, %192 : vector<16x32xf32>
    %cst_119 = arith.constant 1.000000e+00 : f32
    %194 = vector.broadcast %cst_119 : f32 to vector<16x32xf32>
    %195 = arith.mulf %193, %194 : vector<16x32xf32>
    %196 = arith.addf %1, %195 : vector<16x32xf32>
    %c0_120 = arith.constant 0 : index
    %c0_121 = arith.constant 0 : index
    %c0_122 = arith.constant 0 : index
    %197 = vector.load %arg12[%c0_120, %c0_121, %c0_122] : memref<1x16x32xf32, #tpu.memory_space<vmem>>, vector<1x16x32xf32>
    %198 = vector.shape_cast %197 : vector<1x16x32xf32> to vector<16x32xf32>
    %199 = vector.shape_cast %196 : vector<16x32xf32> to vector<1x16x32xf32>
    tpu.vector_store %arg12[%c0_120, %c0_121, %c0_122], %199 {strides = array<i32>} : memref<1x16x32xf32, #tpu.memory_space<vmem>>, vector<1x16x32xf32>,
    return
  }
  func.func @transform_0(%arg0: i32) -> (i32, i32, i32) {
    %c0_i32 = arith.constant 0 : i32
    %c0_i32_0 = arith.constant 0 : i32
    %c0_i32_1 = arith.constant 0 : i32
    return %arg0, %c0_i32, %c0_i32_0 : i32, i32, i32
  }
  func.func @transform_1(%arg0: i32) -> (i32, i32) {
    %c0_i32 = arith.constant 0 : i32
    %c0_i32_0 = arith.constant 0 : i32
    %c0_i32_1 = arith.constant 0 : i32
    return %c0_i32, %c0_i32_0 : i32, i32
  }
  func.func @transform_2(%arg0: i32) -> (i32, i32) {
    %c0_i32 = arith.constant 0 : i32
    %c0_i32_0 = arith.constant 0 : i32
    %c0_i32_1 = arith.constant 0 : i32
    return %c0_i32, %c0_i32_0 : i32, i32
  }
  func.func @transform_3(%arg0: i32) -> (i32, i32, i32) {
    %c0_i32 = arith.constant 0 : i32
    %c0_i32_0 = arith.constant 0 : i32
    %c0_i32_1 = arith.constant 0 : i32
    %c0_i32_2 = arith.constant 0 : i32
    return %c0_i32, %c0_i32_0, %c0_i32_1 : i32, i32, i32
  }
  func.func @transform_4(%arg0: i32) -> (i32, i32, i32) {
    %c0_i32 = arith.constant 0 : i32
    %c0_i32_0 = arith.constant 0 : i32
    %c0_i32_1 = arith.constant 0 : i32
    %c0_i32_2 = arith.constant 0 : i32
    return %c0_i32, %c0_i32_0, %c0_i32_1 : i32, i32, i32
  }
  func.func @transform_5(%arg0: i32) -> (i32, i32, i32) {
    %c0_i32 = arith.constant 0 : i32
    %c0_i32_0 = arith.constant 0 : i32
    %c0_i32_1 = arith.constant 0 : i32
    %c0_i32_2 = arith.constant 0 : i32
    return %c0_i32, %c0_i32_0, %c0_i32_1 : i32, i32, i32
  }
  func.func @transform_6(%arg0: i32) -> (i32, i32) {
    %c0_i32 = arith.constant 0 : i32
    %c0_i32_0 = arith.constant 0 : i32
    %c0_i32_1 = arith.constant 0 : i32
    return %c0_i32, %c0_i32_0 : i32, i32
  }
  func.func @transform_7(%arg0: i32) -> (i32, i32) {
    %c0_i32 = arith.constant 0 : i32
    %c0_i32_0 = arith.constant 0 : i32
    %c0_i32_1 = arith.constant 0 : i32
    return %c0_i32, %c0_i32_0 : i32, i32
  }
  func.func @transform_8(%arg0: i32) -> (i32, i32) {
    %c0_i32 = arith.constant 0 : i32
    %c0_i32_0 = arith.constant 0 : i32
    %c0_i32_1 = arith.constant 0 : i32
    return %c0_i32, %c0_i32_0 : i32, i32
  }
  func.func @transform_9(%arg0: i32) -> (i32, i32, i32) {
    %c0_i32 = arith.constant 0 : i32
    %c0_i32_0 = arith.constant 0 : i32
    %c0_i32_1 = arith.constant 0 : i32
    %c0_i32_2 = arith.constant 0 : i32
    return %c0_i32, %c0_i32_0, %c0_i32_1 : i32, i32, i32
  }
  func.func @transform_10(%arg0: i32) -> (i32, i32) {
    %c0_i32 = arith.constant 0 : i32
    %c0_i32_0 = arith.constant 0 : i32
    %c0_i32_1 = arith.constant 0 : i32
    return %c0_i32, %c0_i32_0 : i32, i32
  }
  func.func @transform_11(%arg0: i32) -> (i32, i32, i32) {
    %c0_i32 = arith.constant 0 : i32
    %c0_i32_0 = arith.constant 0 : i32
    %c0_i32_1 = arith.constant 0 : i32
    return %arg0, %c0_i32, %c0_i32_0 : i32, i32, i32
  }
}

</mosaic_0001>

<bundles_post_ra>
// kernel: tpu_custom_call.1
= control target key start
LH: loop header
LB: loop body
LE: loop exit
PB: predicated region body
PF: predicated region fallthrough
CT: control target
= control target key end

     0   :  { %s2243_s0 = inlined_call_operand.vmem [shape: f32[2,16,32], index: 0, kind: input, shape index: {}]   ;;  %s2244_s1 = inlined_call_operand.vmem [shape: f32[1,32], index: 1, kind: input, shape index: {}]   ;;  %s2245_s2 = inlined_call_operand.vmem [shape: f32[1,32], index: 2, kind: input, shape index: {}]   ;;  %s2246_s3 = inlined_call_operand.vmem [shape: f32[4,32,8], index: 3, kind: input, shape index: {}]   ;;  %s2247_s4 = inlined_call_operand.vmem [shape: f32[4,32,8], index: 4, kind: input, shape index: {}]   ;;  %s2248_s5 = inlined_call_operand.vmem [shape: f32[4,32,8], index: 5, kind: input, shape index: {}]   ;;  %s2249_s6 = inlined_call_operand.vmem [shape: f32[4,8], index: 6, kind: input, shape index: {}]   ;;  %s2250_s7 = inlined_call_operand.vmem [shape: f32[4,8], index: 7, kind: input, shape index: {}]   ;;  %s2251_s8 = inlined_call_operand.vmem [shape: f32[4,8], index: 8, kind: input, shape index: {}]   ;;  %s2252_s9 = inlined_call_operand.vmem [shape: f32[4,8,32], index: 9, kind: input, shape index: {}]   ;;  %s2253_s10 = inlined_call_operand.vmem [shape: f32[1,32], index: 10, kind: input, shape index: {}]   ;;  %s2254_s11 = inlined_call_operand.hbm [shape: f32[2,16,32], index: 11, kind: output, shape index: {}]  }
   0x1   :  { %2255 = sst [smem:[#allocation5_spill]] %s2243_s0 }
   0x2   :  { %2256 = sst [smem:[#allocation6_spill]] %s2244_s1 }
   0x3   :  { %16 = vsyncpa [#allocation3], 0 }
   0x4   :  { %18 = vsyncpa [#allocation3 + $0x1], 0  ;;  %s1820_s17 = smov 0   ;;  %s1822_s18 = smov 0  }
   0x5   :  { %s1824_s19 = smov 0   ;;  %s1826_s20 = smov 0  }
   0x6 LB: > { %s1841_s21 = sadd.s32 4294967295, %s1755_s20   ;;  %s1487_s22 = sadd.s32 4294967294, %s1755_s20   ;;  %s1755_s20 = sphi %s1826_s20, %s2264_s20   ;;  %s1751_s19 = sphi %s1824_s19, %s2263_s19   ;;  %s1747_s18 = sphi %s1822_s18, %s2262_s18   ;;  %s1743_s17 = sphi %s1820_s17, %s2261_s17  }
   0x7   : > { %s1845_s23 = sadd.s32 1, %s1755_s20   ;;  %s267_s24 = sadd.s32 1, %s1751_s19 }
   0x8   : > { %s264_s25 = ssub.s32 %s1755_s20, %s1845_s23  ;;  %p277_p0 = scmp.ne.s32.totalorder %s1751_s19, %s1747_s18 }
   0x9   : > { %p265_p1 = scmp.eq.s32.totalorder %s264_s25, 0  ;;  %p278_p2 = scmp.eq.s32.totalorder %s1841_s21, 1 }
   0xa   : > { %p283_p3 = scmp.ne.s32.totalorder %s1747_s18, %s1743_s17  ;;  %p284_p4 = scmp.eq.s32.totalorder %s1487_s22, 1 }
   0xb   : > { %s1856_s26 = scalar_select %p265_p1, %s1751_s19, %s267_s24  }
   0xc   : > { %p1858_p5 = por %p278_p2, %p277_p0  ;;  %p1862_p6 = por %p284_p4, %p283_p3 }
   0xd   : > { %p1490_p7 = scmp.ge.s32.totalorder %s1755_s20, 1  ;;  %p340_p8 = scmp.lt.s32.totalorder %s1755_s20, 3 }
   0xf   : > { %p341_p9 = pnand %p1490_p7, %p340_p8 }
  0x10   : > { %p380_p10 = scmp.lt.s32.totalorder (!%p341_p9), %s1841_s21, 1  ;;  %s2259_s0 = sld [smem:[#allocation5_spill]] (!%p341_p9) }
  0x11   : > { %344 = sbr.rel (%p341_p9) target bundleno = 2609 (0xa31), region = 64  ;;  %s2260_s1 = sld [smem:[#allocation6_spill]] (!%p341_p9) }
  0x12   : > { %s377_s22 = sand.u32 (!%p341_p9), 1, %s1747_s18  }
  0x16   : > { %s381_s29 = scalar_select %p380_p10, %s1841_s21, 1  ;;  %vm387_vm0 = vcmask 261120   ;;  %v1757_v4 = vmov 32.0   ;;  %v454_v21 = vld [vmem:[%s2246_s3 + $0x18] sm:$0xff]  ;;  %v453_v24 = vld [vmem:[%s2246_s3 + $0x10] sm:$0xff]  ;;  %v452_v27 = vld [vmem:[%s2246_s3 + $0x8] sm:$0xff] }
  0x17   : > { %1653 = vrcp.f32 %v1757_v4  ;;  %v489_v22 = vld [vmem:[%s2247_s4 + $0x18] sm:$0xff]  ;;  %475 = vmatpush.msra.mxu0 %v454_v21  ;;  %v488_v25 = vld [vmem:[%s2247_s4 + $0x10] sm:$0xff]  ;;  %v487_v28 = vld [vmem:[%s2247_s4 + $0x8] sm:$0xff]  ;;  %vm546_vm8 = vcmask 64512   ;;  %vm582_vm9 = vcmask 130048  }
  0x18   : > { %s1594_s30 = sshll.u32 %s381_s29, 4  ;;  %v518_v23 = vld [vmem:[%s2248_s5 + $0x18] sm:$0xff]  ;;  %504 = vmatpush.msra.mxu1 %v489_v22  ;;  %v517_v26 = vld [vmem:[%s2248_s5 + $0x10] sm:$0xff]  ;;  %v516_v29 = vld [vmem:[%s2248_s5 + $0x8] sm:$0xff]  ;;  %s1491_s29 = sshll.u32 %s377_s22, 4 }
  0x19   : > { %s1873_s14 = scalar_lea.vmem %s2259_s0, %s1594_s30  ;;  %533 = vmatpush.msra.mxu2 %v518_v23  ;;  %476 = vmatpush.msra.mxu0 %v453_v24  ;;  %v451_v30 = vld [vmem:[%s2246_s3] sm:$0xff]  ;;  %v1509_v36 = vld [vmem:[%s2246_s3 + $0x38] sm:$0xff]  ;;  %v1508_v38 = vld [vmem:[%s2246_s3 + $0x30] sm:$0xff]  ;;  %s1595_s30 = sshll.u32 %s1841_s21, 4 }
  0x1a   : > { %v385_v0 = vld [vmem:[%s1873_s14] sm:$0xff]  ;;  %v386_v2 = vld [vmem:[%s1873_s14 + $0x8] sm:$0xff]  ;;  %505 = vmatpush.msra.mxu1 %v488_v25  ;;  %v1515_v37 = vld [vmem:[%s2247_s4 + $0x38] sm:$0xff]  ;;  %s1421_s13 = scalar_lea.hbm %s2254_s11, %s1595_s30  ;;  %s379_s15 = scalar_lea.vmem [#allocation2], %s1491_s29 }
  0x1b   : > { %v388_v1 = vsel %vm387_vm0, %v385_v0, 0.0  ;;  %v391_v3 = vsel %vm387_vm0, %v386_v2, 0.0  ;;  %534 = vmatpush.msra.mxu2 %v517_v26  ;;  %477 = vmatpush.msra.mxu0 %v452_v27  ;;  %v486_v31 = vld [vmem:[%s2247_s4] sm:$0xff]  ;;  %v1514_v39 = vld [vmem:[%s2247_s4 + $0x30] sm:$0xff]  ;;  %v1507_v41 = vld [vmem:[%s2246_s3 + $0x28] sm:$0xff]  ;;  %s1422_s16 = sshll.u32 %s379_s15, 4  ;;  %s1423_s16 = int_to_ptr.vmem [resolvable:$true] %s1422_s16 }
  0x1c   : > { %389 = vadd.xlane.f32.xlu0 %v388_v1  ;;  %506 = vmatpush.msra.mxu1 %v487_v28  ;;  %v515_v32 = vld [vmem:[%s2248_s5] sm:$0xff]  ;;  %v1513_v42 = vld [vmem:[%s2247_s4 + $0x28] sm:$0xff]  ;;  %s1424_s24 = sshll.u32 %s1421_s13, 4  ;;  %s1410_s21 = scalar_lea.sflag [#allocation3], %s377_s22  ;;  %s1425_s24 = int_to_ptr.hbm [resolvable:$true] %s1424_s24 }
  0x1d   : > { %v1654_v5 = vpop.eup %1653  ;;  %535 = vmatpush.msra.mxu2 %v516_v29  ;;  %478 = vmatpush.msra.mxu0 %v451_v30  ;;  %v1506_v44 = vld [vmem:[%s2246_s3 + $0x20] sm:$0xff]  ;;  %v1519_v22 = vld [vmem:[%s2248_s5 + $0x28] sm:$0xff]  ;;  %s1707_s25 = sshra.s32 %s1425_s24, 4  ;;  %s1713_s0 = scalar_lea.hbm %s2254_s11, 32  ;;  %s1708_s25 = int_to_ptr.hbm [resolvable:$true] %s1707_s25 }
  0x1e   : > { %v395_v6 = vmul.f32 32.0, %v1654_v5  ;;  %vm399_vm1 = vweird.f32 %v1654_v5  ;;  %507 = vmatpush.msra.mxu1 %v486_v31  ;;  %v1512_v45 = vld [vmem:[%s2247_s4 + $0x20] sm:$0xff]  ;;  %s1709_s30 = scalar_lea.hbm %s1708_s25, 16  ;;  %p1714_p0 = scmp.lt.s32.totalorder %s1708_s25, %s2254_s11 }
  0x1f   : > { %536 = vmatpush.msra.mxu2 %v515_v32  ;;  %v1638_v55 = vld [vmem:[%s2260_s1] ss:$0 sm:$0xff]  ;;  %v1644_v27 = vld [vmem:[%s2250_s7 + $0x1] ss:$0 sm:$0xff]  ;;  %p1710_p11 = scmp.ne.s32.totalorder %s1708_s25, %s1709_s30  ;;  %p1715_p1 = scmp.lt.s32.totalorder %s1713_s0, %s1709_s30 }
  0x20   : > { %v396_v7 = vsub.f32 1.0, %v395_v6  ;;  %680 = vmatpush.msrb.mxu1 %v1509_v36  ;;  %v1639_v58 = vld [vmem:[%s2245_s2] ss:$0 sm:$0xff]  ;;  %v1645_v36 = vld [vmem:[%s2251_s8 + $0x1] ss:$0 sm:$0xff] }
  0x21   : > { %710 = vmatpush.msrb.mxu2 %v1515_v37  ;;  %v1518_v24 = vld [vmem:[%s2248_s5 + $0x20] sm:$0xff]  ;;  %p1711_p12 = pnand %p1710_p11, %p1858_p5  ;;  %p1716_p2 = por %p1715_p1, %p1714_p0 }
  0x22   : > { %v397_v8 = vmul.f32 %v1654_v5, %v396_v7  ;;  %681 = vmatpush.msrb.mxu1 %v1508_v38  ;;  %v1641_v7 = vld [vmem:[%s2250_s7] ss:$0 sm:$0xff] }
  0x23   : > { %711 = vmatpush.msrb.mxu2 %v1514_v39  ;;  %p1712_p13 = pneg %p1711_p12 }
  0x24   : > { %392 = vadd.xlane.f32.xlu0 %v391_v3  ;;  %v398_v9 = vadd.f32 %v1654_v5, %v397_v8  ;;  %682 = vmatpush.msrb.mxu1 %v1507_v41 }
  0x25   : > { %712 = vmatpush.msrb.mxu2 %v1513_v42  ;;  %p1717_p3 = pnand %p1716_p2, %p1712_p13 }
  0x26   : > { %v400_v10 = vsel %vm399_vm1, %v1654_v5, %v398_v9  ;;  %683 = vmatpush.msrb.mxu1 %v1506_v44  ;;  %v1640_v9 = vld [vmem:[%s2249_s6] ss:$0 sm:$0xff] }
  0x27   : > { %713 = vmatpush.msrb.mxu2 %v1512_v45 }
  0x8f   : > { %v390_v11 = vpop.xlane.xlu0 %389 }
  0x90   : > { %v401_v12 = vmul.f32 %v400_v10, %v390_v11 }
  0x92   : > { %v1879_v13 = vsub.f32 %v385_v0, %v401_v12 }
  0x94   : > { %v405_v14 = vmul.f32 %v1879_v13, %v1879_v13 }
  0x96   : > { %v407_v15 = vsel %vm387_vm0, %v405_v14, 0.0  ;;  %v1521_v14 = vld [vmem:[%s2248_s5 + $0x38] sm:$0xff] }
  0x97   : > { %408 = vadd.xlane.f32.xlu1 %v407_v15  ;;  %v393_v16 = vpop.xlane.xlu0 %392  ;;  %v1642_v15 = vld [vmem:[%s2251_s8] ss:$0 sm:$0xff] }
  0x98   : > { %v402_v17 = vmul.f32 %v400_v10, %v393_v16 }
  0x9a   : > { %v1884_v18 = vsub.f32 %v386_v2, %v402_v17 }
  0x9c   : > { %v406_v19 = vmul.f32 %v1884_v18, %v1884_v18 }
  0x9e   : > { %v410_v20 = vsel %vm387_vm0, %v406_v19, 0.0  ;;  %v1520_v19 = vld [vmem:[%s2248_s5 + $0x30] sm:$0xff] }
  0x9f   : > { %411 = vadd.xlane.f32.xlu1 %v410_v20 }
 0x10a   : > { %v409_v33 = vpop.xlane.xlu1 %408 }
 0x10b   : > { %v413_v34 = vmul.f32 %v409_v33, %v400_v10 }
 0x10d   : > { %v415_v35 = vadd.f32 1e-05, %v413_v34 }
 0x10f   : > { %1655 = vrsqrt.f32 %v415_v35  ;;  %vm423_vm3 = vweird.f32 %v415_v35 }
 0x112   : > { %v412_v40 = vpop.xlane.xlu1 %411 }
 0x113   : > { %v414_v43 = vmul.f32 %v412_v40, %v400_v10 }
 0x115   : > { %v1656_v46 = vpop.eup %1655  ;;  %v416_v47 = vadd.f32 1e-05, %v414_v43 }
 0x116   : > { %v418_v48 = vmul.f32 %v1656_v46, %v415_v35  ;;  %vm424_vm2 = vweird.f32 %v1656_v46 }
 0x117   : > { %1657 = vrsqrt.f32 %v416_v47  ;;  %vm425_vm4 = vmor %vm423_vm3, %vm424_vm2  ;;  %vm433_vm6 = vweird.f32 %v416_v47 }
 0x118   : > { %v419_v49 = vmul.f32 %v1656_v46, %v418_v48 }
 0x11a   : > { %v420_v50 = vmul.f32 0.5, %v419_v49 }
 0x11c   : > { %v421_v51 = vsub.f32 1.5, %v420_v50 }
 0x11d   : > { %v1658_v52 = vpop.eup %1657 }
 0x11e   : > { %v422_v53 = vmul.f32 %v1656_v46, %v421_v51  ;;  %v428_v54 = vmul.f32 %v1658_v52, %v416_v47  ;;  %vm434_vm5 = vweird.f32 %v1658_v52 }
 0x11f   : > { %vm435_vm7 = vmor %vm433_vm6, %vm434_vm5 }
 0x120   : > { %v426_v56 = vsel %vm425_vm4, %v1656_v46, %v422_v53  ;;  %v429_v57 = vmul.f32 %v1658_v52, %v428_v54 }
 0x121   : > { %v437_v59 = vmul.f32 %v426_v56, %v1879_v13 }
 0x122   : > { %v430_v60 = vmul.f32 0.5, %v429_v57 }
 0x123   : > { %v443_v61 = vmul.f32 %v1638_v55, %v437_v59 }
 0x124   : > { %v431_v62 = vsub.f32 1.5, %v430_v60 }
 0x125   : > { %v1956_v63 = vadd.f32 %v1639_v58, %v443_v61 }
 0x126   : > { %v432_v0 = vmul.f32 %v1658_v52, %v431_v62 }
 0x127   : > { %1494 = vmatmul.msk.f32.vlgmr.msra.gmra.mxu0 %vm387_vm0, %v1956_v63  ;;  %1496 = vmatmul.msk.f32.vlgmr.msra.gmra.mxu1 %vm387_vm0, %v1956_v63 }
 0x128   : > { %v436_v1 = vsel %vm435_vm7, %v1658_v52, %v432_v0  ;;  %1498 = vmatmul.msk.f32.vlgmr.msra.gmra.mxu2 %vm387_vm0, %v1956_v63 }
 0x129   : > { %v438_v2 = vmul.f32 %v436_v1, %v1884_v18 }
 0x12b   : > { %v444_v3 = vmul.f32 %v1638_v55, %v438_v2 }
 0x12d   : > { %v1965_v4 = vadd.f32 %v1639_v58, %v444_v3  ;;  %v1538_v3 = vld [vmem:[%s2246_s3 + $0x58] sm:$0xff] }
 0x12f   : > { %1495 = vmatmul.msk.f32.gmra.mxu0 %vm387_vm0, %v1965_v4  ;;  %1497 = vmatmul.msk.f32.gmra.mxu1 %vm387_vm0, %v1965_v4 }
 0x130   : > { %1499 = vmatmul.msk.f32.gmra.mxu2 %vm387_vm0, %v1965_v4 }
 0x137   : > { %1510 = vmatmul.msk.f32.vlgmr.msrb.gmra.mxu1 %vm387_vm0, %v1956_v63 }
 0x138   : > { %1516 = vmatmul.msk.f32.vlgmr.msrb.gmra.mxu2 %vm387_vm0, %v1956_v63 }
 0x13f   : > { %1511 = vmatmul.msk.f32.gmra.mxu1 %vm387_vm0, %v1965_v4 }
 0x140   : > { %1517 = vmatmul.msk.f32.gmra.mxu2 %vm387_vm0, %v1965_v4 }
 0x1a4   : > { %v509_v5 = vpop.f32.mrf.mxu1  ;;  %v480_v6 = vpop.f32.mrf.mxu0 }
 0x1a5   : > { %v481_v12 = vadd.f32 %v1640_v9, %v480_v6  ;;  %v510_v13 = vadd.f32 %v1641_v7, %v509_v5 }
 0x1a7   : > { %v544_v17 = vmul.f32 0.35355338, %v481_v12 }
 0x1ab   : > { %v538_v8 = vpop.f32.mrf.mxu2 }
 0x1ac   : > { %v512_v10 = vpop.f32.mrf.mxu1  ;;  %v483_v20 = vpop.f32.mrf.mxu0  ;;  %v539_v21 = vadd.f32 %v1642_v15, %v538_v8  ;;  %v1537_v8 = vld [vmem:[%s2246_s3 + $0x50] sm:$0xff] }
 0x1ad   : > { %v513_v11 = vadd.f32 %v1641_v7, %v512_v10  ;;  %v484_v23 = vadd.f32 %v1640_v9, %v483_v20  ;;  %v1536_v10 = vld [vmem:[%s2246_s3 + $0x48] sm:$0xff] }
 0x1af   : > { %1500 = vmatpush.xpose.msk.msra.mxu3 %vm546_vm8, %v513_v11  ;;  %v545_v26 = vmul.f32 0.35355338, %v484_v23  ;;  %v660_v23 = vld [vmem:[%s2252_s9] sm:$0xff] }
 0x1b3   : > { %v541_v16 = vpop.f32.mrf.mxu2  ;;  %1501 = vmatpush.xpose.msk.msra.mxu3 %vm546_vm8, %v510_v13  ;;  %v1535_v13 = vld [vmem:[%s2246_s3 + $0x40] sm:$0xff] }
 0x1b4   : > { %v542_v18 = vadd.f32 %v1642_v15, %v541_v16  ;;  %v1643_v16 = vld [vmem:[%s2249_s6 + $0x1] ss:$0 sm:$0xff] }
 0x1b6   : > { %651 = vmatpush.msrb.mxu0 %v542_v18  ;;  %1502 = vmatmul.msk.f32.vlgmr.msra.gmra.mxu3 %vm546_vm8, %v544_v17 }
 0x1b7   : > { %740 = vmatpush.msrb.mxu3 %v1521_v14  ;;  %v685_v14 = vpop.f32.mrf.mxu1 }
 0x1b8   : > { %652 = vmatpush.msrb.mxu0 %v539_v21  ;;  %v686_v18 = vadd.f32 %v1643_v16, %v685_v14  ;;  %v1563_v14 = vld [vmem:[%s2246_s3 + $0x68] sm:$0xff] }
 0x1b9   : > { %741 = vmatpush.msrb.mxu3 %v1520_v19 }
 0x1ba   : > { %v751_v19 = vmul.f32 0.35355338, %v686_v18 }
 0x1bb   : > { %742 = vmatpush.msrb.mxu3 %v1519_v22  ;;  %v715_v25 = vpop.f32.mrf.mxu2 }
 0x1bc   : > { %v716_v30 = vadd.f32 %v1644_v27, %v715_v25 }
 0x1bd   : > { %743 = vmatpush.msrb.mxu3 %v1518_v24 }
 0x1be   : > { %1503 = vmatmul.msk.f32.gmra.mxu3 %vm546_vm8, %v545_v26 }
 0x1bf   : > { %v688_v20 = vpop.f32.mrf.mxu1  ;;  %917 = vmatpush.msra.mxu3 %v660_v23 }
 0x1c0   : > { %v689_v21 = vadd.f32 %v1643_v16, %v688_v20  ;;  %v1646_v20 = vld [vmem:[%s2249_s6 + $0x2] ss:$0 sm:$0xff] }
 0x1c2   : > { %v752_v22 = vmul.f32 0.35355338, %v689_v21 }
 0x1c3   : > { %v718_v28 = vpop.f32.mrf.mxu2 }
 0x1c4   : > { %v719_v29 = vadd.f32 %v1644_v27, %v718_v28 }
 0x1c6   : > { %1524 = vmatpush.xpose.msk.msra.mxu0 %vm546_vm8, %v719_v29  ;;  %1522 = vmatmul.msk.f32.vlgmr.msrb.gmra.mxu3 %vm387_vm0, %v1956_v63 }
 0x1ca   : > { %1525 = vmatpush.xpose.msk.msra.mxu0 %vm546_vm8, %v716_v30 }
 0x1ce   : > { %1523 = vmatmul.msk.f32.gmra.mxu3 %vm387_vm0, %v1965_v4 }
 0x239   : > { %v576_v31 = vpop.f32.mrf.mxu3 }
 0x23a   : > { %v583_v32 = vsel %vm582_vm9, %v576_v31, -inf }
 0x23b   : > { %584 = vmax.xlane.f32.xlu2 %v583_v32 }
 0x241   : > { %v579_v33 = vpop.f32.mrf.mxu3 }
 0x242   : > { %v586_v34 = vsel %vm582_vm9, %v579_v33, -inf }
 0x243   : > { %587 = vmax.xlane.f32.xlu2 %v586_v34 }
 0x249   : > { %v745_v35 = vpop.f32.mrf.mxu3 }
 0x24a   : > { %v746_v39 = vadd.f32 %v1645_v36, %v745_v35 }
 0x251   : > { %v748_v37 = vpop.f32.mrf.mxu3 }
 0x252   : > { %v749_v38 = vadd.f32 %v1645_v36, %v748_v37 }
 0x254   : > { %856 = vmatpush.msra.mxu1 %v749_v38 }
 0x256   : > { %857 = vmatpush.msra.mxu1 %v746_v39 }
 0x2ae   : > { %v585_v40 = vpop.xlane.xlu2 %584 }
 0x2af   : > { %v589_v41 = vsub.f32 %v576_v31, %v585_v40  ;;  %v1544_v40 = vld [vmem:[%s2247_s4 + $0x58] sm:$0xff] }
 0x2b0   : > { %974 = vmatpush.msrb.mxu1 %v1544_v40 }
 0x2b1   : > { %v591_v42 = vmul.f32 1.442695, %v589_v41  ;;  %v1543_v41 = vld [vmem:[%s2247_s4 + $0x50] sm:$0xff] }
 0x2b2   : > { %975 = vmatpush.msrb.mxu1 %v1543_v41 }
 0x2b3   : > { %1659 = vpow2.f32 %v591_v42  ;;  %v1542_v42 = vld [vmem:[%s2247_s4 + $0x48] sm:$0xff] }
 0x2b4   : > { %976 = vmatpush.msrb.mxu1 %v1542_v42  ;;  %v1559_v42 = vld [vmem:[%s2252_s9 + $0x10] sm:$0xff] }
 0x2b6   : > { %v588_v43 = vpop.xlane.xlu2 %587 }
 0x2b7   : > { %v590_v44 = vsub.f32 %v579_v33, %v588_v43 }
 0x2b9   : > { %v1660_v45 = vpop.eup %1659  ;;  %v593_v46 = vmul.f32 1.442695, %v590_v44  ;;  %v1541_v44 = vld [vmem:[%s2247_s4 + $0x40] sm:$0xff] }
 0x2ba   : > { %v595_v47 = vsel %vm582_vm9, %v1660_v45, 0.0  ;;  %977 = vmatpush.msrb.mxu1 %v1541_v44 }
 0x2bb   : > { %1661 = vpow2.f32 %v593_v46  ;;  %596 = vadd.xlane.f32.xlu0 %v595_v47 }
 0x2c1   : > { %v1662_v48 = vpop.eup %1661 }
 0x2c2   : > { %v598_v49 = vsel %vm582_vm9, %v1662_v48, 0.0 }
 0x2c3   : > { %599 = vadd.xlane.f32.xlu1 %v598_v49 }
 0x32e   : > { %v597_v50 = vpop.xlane.xlu0 %596 }
 0x32f   : > { %1663 = vrcp.f32 %v597_v50  ;;  %v612_v55 = vand.u32 2147483648, %v597_v50  ;;  %v610_v57 = vand.u32 2147483647, %v597_v50  ;;  %vm606_vm11 = vweird.f32 %v597_v50 }
 0x331   : > { %v613_v60 = vor.u32 1.1754944e-38, %v612_v55  ;;  %vm611_vm13 = vcmp.eq.f32.partialorder %v610_v57, 8.507059e+37 }
 0x335   : > { %v1664_v51 = vpop.eup %1663 }
 0x336   : > { %v602_v52 = vmul.f32 %v1664_v51, %v597_v50  ;;  %v600_v53 = vpop.xlane.xlu1 %599  ;;  %vm607_vm10 = vweird.f32 %v1664_v51 }
 0x337   : > { %1665 = vrcp.f32 %v600_v53  ;;  %vm608_vm12 = vmor %vm606_vm11, %vm607_vm10  ;;  %v627_v5 = vand.u32 2147483648, %v600_v53  ;;  %v625_v7 = vand.u32 2147483647, %v600_v53  ;;  %vm621_vm15 = vweird.f32 %v600_v53 }
 0x338   : > { %v603_v54 = vsub.f32 1.0, %v602_v52 }
 0x339   : > { %v628_v11 = vor.u32 1.1754944e-38, %v627_v5  ;;  %vm626_vm2 = vcmp.eq.f32.partialorder %v625_v7, 8.507059e+37  ;;  %v1550_v7 = vld [vmem:[%s2248_s5 + $0x58] sm:$0xff] }
 0x33a   : > { %v604_v56 = vmul.f32 %v1664_v51, %v603_v54 }
 0x33c   : > { %v605_v58 = vadd.f32 %v1664_v51, %v604_v56 }
 0x33d   : > { %v1666_v59 = vpop.eup %1665 }
 0x33e   : > { %v617_v61 = vmul.f32 %v1666_v59, %v600_v53  ;;  %v609_v62 = vsel %vm608_vm12, %v1664_v51, %v605_v58  ;;  %vm622_vm14 = vweird.f32 %v1666_v59 }
 0x33f   : > { %v614_v0 = vsel %vm611_vm13, %v613_v60, %v609_v62  ;;  %vm623_vm1 = vmor %vm621_vm15, %vm622_vm14 }
 0x340   : > { %v618_v1 = vsub.f32 1.0, %v617_v61  ;;  %v615_v2 = vmul.f32 %v1660_v45, %v614_v0 }
 0x342   : > { %v619_v6 = vmul.f32 %v1666_v59, %v618_v1  ;;  %1504 = vmatmul.msk.f32.vlgmr.msrb.gmra.mxu0 %vm582_vm9, %v615_v2 }
 0x343   : > { %944 = vmatpush.msrb.mxu0 %v1538_v3 }
 0x344   : > { %v620_v9 = vadd.f32 %v1666_v59, %v619_v6  ;;  %v1530_v6 = vld [vmem:[%s2252_s9 + $0x8] sm:$0xff] }
 0x345   : > { %945 = vmatpush.msrb.mxu0 %v1537_v8  ;;  %888 = vmatpush.msra.mxu2 %v1530_v6  ;;  %v1549_v8 = vld [vmem:[%s2248_s5 + $0x50] sm:$0xff] }
 0x346   : > { %v624_v12 = vsel %vm623_vm1, %v1666_v59, %v620_v9  ;;  %v1548_v9 = vld [vmem:[%s2248_s5 + $0x48] sm:$0xff] }
 0x347   : > { %v629_v15 = vsel %vm626_vm2, %v628_v11, %v624_v12  ;;  %946 = vmatpush.msrb.mxu0 %v1536_v10  ;;  %1004 = vmatpush.msrb.mxu2 %v1550_v7  ;;  %v1547_v10 = vld [vmem:[%s2248_s5 + $0x40] sm:$0xff]  ;;  %v1565_v11 = vld [vmem:[%s2246_s3 + $0x78] sm:$0xff] }
 0x348   : > { %v630_v17 = vmul.f32 %v1662_v48, %v629_v15  ;;  %v1562_v15 = vld [vmem:[%s2246_s3 + $0x60] sm:$0xff] }
 0x349   : > { %947 = vmatpush.msrb.mxu0 %v1535_v13  ;;  %1005 = vmatpush.msrb.mxu2 %v1549_v8  ;;  %v1564_v13 = vld [vmem:[%s2246_s3 + $0x70] sm:$0xff] }
 0x34a   : > { %1505 = vmatmul.msk.f32.gmra.mxu0 %vm582_vm9, %v630_v17 }
 0x34b   : > { %1006 = vmatpush.msrb.mxu2 %v1548_v9 }
 0x34d   : > { %1007 = vmatpush.msrb.mxu2 %v1547_v10 }
 0x352   : > { %1526 = vmatmul.msk.f32.vlgmr.msra.gmra.mxu0 %vm546_vm8, %v751_v19  ;;  %v1647_v19 = vld [vmem:[%s2250_s7 + $0x2] ss:$0 sm:$0xff] }
 0x35a   : > { %1527 = vmatmul.msk.f32.gmra.mxu0 %vm546_vm8, %v752_v22 }
 0x362   : > { %1539 = vmatmul.msk.f32.vlgmr.msrb.gmra.mxu0 %vm387_vm0, %v1956_v63 }
 0x36a   : > { %1540 = vmatmul.msk.f32.gmra.mxu0 %vm387_vm0, %v1965_v4 }
 0x3bf   : > { %v654_v24 = vpop.f32.mrf.mxu0 }
 0x3c0   : > { %1533 = vmatmul.msk.f32.vlgmr.msra.gmra.mxu3 %vm546_vm8, %v654_v24 }
 0x3c7   : > { %v657_v25 = vpop.f32.mrf.mxu0 }
 0x3c8   : > { %1534 = vmatmul.msk.f32.gmra.mxu3 %vm546_vm8, %v657_v25  ;;  %v1571_v25 = vld [vmem:[%s2247_s4 + $0x78] sm:$0xff] }
 0x3cf   : > { %v782_v26 = vpop.f32.mrf.mxu0 }
 0x3d0   : > { %v788_v27 = vsel %vm582_vm9, %v782_v26, -inf }
 0x3d1   : > { %789 = vmax.xlane.f32.xlu2 %v788_v27  ;;  %v1570_v27 = vld [vmem:[%s2247_s4 + $0x70] sm:$0xff] }
 0x3d7   : > { %v785_v28 = vpop.f32.mrf.mxu0 }
 0x3d8   : > { %v791_v29 = vsel %vm582_vm9, %v785_v28, -inf }
 0x3d9   : > { %792 = vmax.xlane.f32.xlu0 %v791_v29  ;;  %v1569_v29 = vld [vmem:[%s2247_s4 + $0x68] sm:$0xff] }
 0x3df   : > { %v949_v18 = vpop.f32.mrf.mxu0 }
 0x3e0   : > { %v950_v23 = vadd.f32 %v1646_v20, %v949_v18 }
 0x444   : > { %v790_v30 = vpop.xlane.xlu2 %789 }
 0x445   : > { %v794_v31 = vsub.f32 %v782_v26, %v790_v30  ;;  %v1015_v26 = vmul.f32 0.35355338, %v950_v23 }
 0x447   : > { %v796_v32 = vmul.f32 1.442695, %v794_v31  ;;  %v1568_v31 = vld [vmem:[%s2247_s4 + $0x60] sm:$0xff] }
 0x449   : > { %1667 = vpow2.f32 %v796_v32 }
 0x44c   : > { %v793_v33 = vpop.xlane.xlu0 %792 }
 0x44d   : > { %v795_v34 = vsub.f32 %v785_v28, %v793_v33  ;;  %v952_v28 = vpop.f32.mrf.mxu0  ;;  %v2135_v33 = vpop.f32.mrf.mxu3 }
 0x44e   : > { %v953_v30 = vadd.f32 %v1646_v20, %v952_v28 }
 0x44f   : > { %v1668_v35 = vpop.eup %1667  ;;  %v798_v36 = vmul.f32 1.442695, %v795_v34 }
 0x450   : > { %v800_v37 = vsel %vm582_vm9, %v1668_v35, 0.0  ;;  %v1016_v32 = vmul.f32 0.35355338, %v953_v30 }
 0x451   : > { %1669 = vpow2.f32 %v798_v36  ;;  %801 = vadd.xlane.f32.xlu1 %v800_v37 }
 0x457   : > { %v1670_v38 = vpop.eup %1669 }
 0x458   : > { %v803_v39 = vsel %vm582_vm9, %v1670_v38, 0.0 }
 0x459   : > { %804 = vadd.xlane.f32.xlu2 %v803_v39  ;;  %v1648_v39 = vld [vmem:[%s2251_s8 + $0x2] ss:$0 sm:$0xff] }
 0x4c4   : > { %v802_v43 = vpop.xlane.xlu1 %801 }
 0x4c5   : > { %1671 = vrcp.f32 %v802_v43  ;;  %v817_v49 = vand.u32 2147483648, %v802_v43  ;;  %v815_v51 = vand.u32 2147483647, %v802_v43  ;;  %vm811_vm4 = vweird.f32 %v802_v43 }
 0x4c7   : > { %v818_v54 = vor.u32 1.1754944e-38, %v817_v49  ;;  %vm816_vm6 = vcmp.eq.f32.partialorder %v815_v51, 8.507059e+37  ;;  %v1650_v49 = vld [vmem:[%s2250_s7 + $0x3] ss:$0 sm:$0xff] }
 0x4cb   : > { %v1672_v45 = vpop.eup %1671 }
 0x4cc   : > { %v807_v46 = vmul.f32 %v1672_v45, %v802_v43  ;;  %v805_v47 = vpop.xlane.xlu2 %804  ;;  %vm812_vm3 = vweird.f32 %v1672_v45 }
 0x4cd   : > { %1673 = vrcp.f32 %v805_v47  ;;  %vm813_vm5 = vmor %vm811_vm4, %vm812_vm3  ;;  %v832_v60 = vand.u32 2147483648, %v805_v47  ;;  %v830_v62 = vand.u32 2147483647, %v805_v47  ;;  %vm826_vm10 = vweird.f32 %v805_v47 }
 0x4ce   : > { %v808_v48 = vsub.f32 1.0, %v807_v46 }
 0x4cf   : > { %v833_v1 = vor.u32 1.1754944e-38, %v832_v60  ;;  %vm831_vm12 = vcmp.eq.f32.partialorder %v830_v62, 8.507059e+37 }
 0x4d0   : > { %v809_v50 = vmul.f32 %v1672_v45, %v808_v48 }
 0x4d2   : > { %v810_v52 = vadd.f32 %v1672_v45, %v809_v50 }
 0x4d3   : > { %v1674_v53 = vpop.eup %1673 }
 0x4d4   : > { %v814_v55 = vsel %vm813_vm5, %v1672_v45, %v810_v52  ;;  %v822_v56 = vmul.f32 %v1674_v53, %v805_v47  ;;  %vm827_vm7 = vweird.f32 %v1674_v53 }
 0x4d5   : > { %v819_v57 = vsel %vm816_vm6, %v818_v54, %v814_v55  ;;  %vm828_vm11 = vmor %vm826_vm10, %vm827_vm7 }
 0x4d6   : > { %v823_v58 = vsub.f32 1.0, %v822_v56  ;;  %v820_v59 = vmul.f32 %v1668_v35, %v819_v57  ;;  %v922_v35 = vpop.f32.mrf.mxu3 }
 0x4d8   : > { %v824_v61 = vmul.f32 %v1674_v53, %v823_v58  ;;  %1528 = vmatmul.msk.f32.vlgmr.msra.gmra.mxu1 %vm582_vm9, %v820_v59 }
 0x4d9   : > { %1152 = vmatpush.msra.mxu1 %v1559_v42 }
 0x4da   : > { %v825_v0 = vadd.f32 %v1674_v53, %v824_v61 }
 0x4dc   : > { %v829_v2 = vsel %vm828_vm11, %v1674_v53, %v825_v0  ;;  %v1577_v0 = vld [vmem:[%s2248_s5 + $0x78] sm:$0xff] }
 0x4dd   : > { %v834_v3 = vsel %vm831_vm12, %v833_v1, %v829_v2  ;;  %v1576_v1 = vld [vmem:[%s2248_s5 + $0x70] sm:$0xff]  ;;  %v1575_v2 = vld [vmem:[%s2248_s5 + $0x68] sm:$0xff] }
 0x4de   : > { %v835_v5 = vmul.f32 %v1670_v38, %v834_v3 }
 0x4e0   : > { %1529 = vmatmul.msk.f32.gmra.mxu1 %vm582_vm9, %v835_v5  ;;  %v1574_v5 = vld [vmem:[%s2248_s5 + $0x60] sm:$0xff] }
 0x4e8   : > { %1545 = vmatmul.msk.f32.vlgmr.msrb.gmra.mxu1 %vm387_vm0, %v1956_v63 }
 0x4f0   : > { %1546 = vmatmul.msk.f32.gmra.mxu1 %vm387_vm0, %v1965_v4 }
 0x555   : > { %v859_v12 = vpop.f32.mrf.mxu1 }
 0x556   : > { %1531 = vmatmul.msk.f32.vlgmr.msra.gmra.mxu2 %vm546_vm8, %v859_v12 }
 0x557   : > { %1181 = vmatpush.msra.mxu2 %v1565_v11 }
 0x559   : > { %1182 = vmatpush.msra.mxu2 %v1564_v13 }
 0x55b   : > { %1183 = vmatpush.msra.mxu2 %v1563_v14 }
 0x55d   : > { %v862_v16 = vpop.f32.mrf.mxu1  ;;  %1184 = vmatpush.msra.mxu2 %v1562_v15 }
 0x55e   : > { %1532 = vmatmul.msk.f32.gmra.mxu2 %vm546_vm8, %v862_v16 }
 0x565   : > { %v979_v17 = vpop.f32.mrf.mxu1 }
 0x566   : > { %1551 = vmatmul.msk.f32.vlgmr.msrb.gmra.mxu2 %vm387_vm0, %v1956_v63  ;;  %v980_v24 = vadd.f32 %v1647_v19, %v979_v17 }
 0x56d   : > { %v982_v21 = vpop.f32.mrf.mxu1 }
 0x56e   : > { %v983_v22 = vadd.f32 %v1647_v19, %v982_v21  ;;  %1552 = vmatmul.msk.f32.gmra.mxu2 %vm387_vm0, %v1965_v4 }
 0x570   : > { %1553 = vmatpush.xpose.msk.msrb.mxu3 %vm546_vm8, %v983_v22 }
 0x574   : > { %1554 = vmatpush.xpose.msk.msrb.mxu3 %vm546_vm8, %v980_v24 }
 0x576   : > { %1566 = vmatmul.msk.f32.vlgmr.msra.gmra.mxu2 %vm387_vm0, %v1956_v63 }
 0x577   : > { %1555 = vmatmul.msk.f32.vlgmr.msrb.gmra.mxu3 %vm546_vm8, %v1015_v26 }
 0x578   : > { %1211 = vmatpush.msra.mxu3 %v1571_v25 }
 0x57a   : > { %1212 = vmatpush.msra.mxu3 %v1570_v27 }
 0x57c   : > { %1213 = vmatpush.msra.mxu3 %v1569_v29 }
 0x57e   : > { %1214 = vmatpush.msra.mxu3 %v1568_v31  ;;  %1567 = vmatmul.msk.f32.gmra.mxu2 %vm387_vm0, %v1965_v4  ;;  %v1649_v31 = vld [vmem:[%s2249_s6 + $0x3] ss:$0 sm:$0xff] }
 0x57f   : > { %1556 = vmatmul.msk.f32.gmra.mxu3 %vm546_vm8, %v1016_v32 }
 0x587   : > { %1572 = vmatmul.msk.f32.vlgmr.msra.gmra.mxu3 %vm387_vm0, %v1956_v63 }
 0x58f   : > { %1573 = vmatmul.msk.f32.gmra.mxu3 %vm387_vm0, %v1965_v4 }
 0x5d9   : > { %v2137_v34 = vpop.f32.mrf.mxu2 }
 0x5e1   : > { %v893_v36 = vpop.f32.mrf.mxu2 }
 0x5e2   : > { %v2139_v37 = vadd.f32 %v922_v35, %v893_v36 }
 0x5e9   : > { %v1009_v38 = vpop.f32.mrf.mxu2 }
 0x5ea   : > { %v1010_v43 = vadd.f32 %v1648_v39, %v1009_v38 }
 0x5f1   : > { %v1012_v40 = vpop.f32.mrf.mxu2 }
 0x5f2   : > { %v1013_v41 = vadd.f32 %v1648_v39, %v1012_v40 }
 0x5f4   : > { %1120 = vmatpush.msra.mxu0 %v1013_v41 }
 0x5f6   : > { %1121 = vmatpush.msra.mxu0 %v1010_v43 }
 0x5f8   : > { %1241 = vmatpush.msrb.mxu0 %v1577_v0 }
 0x5f9   : > { %v1186_v30 = vpop.f32.mrf.mxu2 }
 0x5fa   : > { %v1046_v44 = vpop.f32.mrf.mxu3  ;;  %1242 = vmatpush.msrb.mxu0 %v1576_v1  ;;  %v1187_v35 = vadd.f32 %v1649_v31, %v1186_v30 }
 0x5fb   : > { %v1052_v45 = vsel %vm582_vm9, %v1046_v44, -inf }
 0x5fc   : > { %1053 = vmax.xlane.f32.xlu0 %v1052_v45  ;;  %1243 = vmatpush.msrb.mxu0 %v1575_v2  ;;  %v1252_v36 = vmul.f32 0.35355338, %v1187_v35 }
 0x5fe   : > { %1244 = vmatpush.msrb.mxu0 %v1574_v5 }
 0x601   : > { %v1189_v38 = vpop.f32.mrf.mxu2 }
 0x602   : > { %v1049_v46 = vpop.f32.mrf.mxu3 }
 0x603   : > { %v1055_v47 = vsel %vm582_vm9, %v1049_v46, -inf }
 0x604   : > { %1056 = vmax.xlane.f32.xlu1 %v1055_v47 }
 0x60a   : > { %v1216_v48 = vpop.f32.mrf.mxu3 }
 0x60b   : > { %v1217_v52 = vadd.f32 %v1650_v49, %v1216_v48 }
 0x612   : > { %v1219_v50 = vpop.f32.mrf.mxu3 }
 0x613   : > { %v1220_v51 = vadd.f32 %v1650_v49, %v1219_v50 }
 0x615   : > { %1580 = vmatpush.xpose.msk.msrb.mxu1 %vm546_vm8, %v1220_v51 }
 0x619   : > { %1581 = vmatpush.xpose.msk.msrb.mxu1 %vm546_vm8, %v1217_v52 }
 0x66f   : > { %v1054_v53 = vpop.xlane.xlu0 %1053 }
 0x670   : > { %v1058_v54 = vsub.f32 %v1046_v44, %v1054_v53  ;;  %v920_v44 = vadd.f32 %v2135_v33, %v2137_v34 }
 0x672   : > { %v1060_v55 = vmul.f32 1.442695, %v1058_v54 }
 0x674   : > { %1675 = vpow2.f32 %v1060_v55 }
 0x677   : > { %v1057_v56 = vpop.xlane.xlu1 %1056 }
 0x678   : > { %v1059_v57 = vsub.f32 %v1049_v46, %v1057_v56 }
 0x67a   : > { %v1676_v58 = vpop.eup %1675  ;;  %v1062_v59 = vmul.f32 1.442695, %v1059_v57 }
 0x67b   : > { %v1064_v60 = vsel %vm582_vm9, %v1676_v58, 0.0 }
 0x67c   : > { %1677 = vpow2.f32 %v1062_v59  ;;  %1065 = vadd.xlane.f32.xlu2 %v1064_v60  ;;  %v1586_v60 = vld [vmem:[%s2252_s9 + $0x18] sm:$0xff] }
 0x67d   : > { %1389 = vmatpush.msrb.mxu3 %v1586_v60 }
 0x682   : > { %v1678_v61 = vpop.eup %1677 }
 0x683   : > { %v1067_v62 = vsel %vm582_vm9, %v1678_v61, 0.0 }
 0x684   : > { %1068 = vadd.xlane.f32.xlu0 %v1067_v62 }
 0x6ef   : > { %v1066_v3 = vpop.xlane.xlu2 %1065 }
 0x6f0   : > { %1679 = vrcp.f32 %v1066_v3  ;;  %v1081_v10 = vand.u32 2147483648, %v1066_v3  ;;  %v1079_v12 = vand.u32 2147483647, %v1066_v3  ;;  %vm1075_vm14 = vweird.f32 %v1066_v3 }
 0x6f2   : > { %v1082_v15 = vor.u32 1.1754944e-38, %v1081_v10  ;;  %vm1080_vm1 = vcmp.eq.f32.partialorder %v1079_v12, 8.507059e+37 }
 0x6f6   : > { %v1680_v6 = vpop.eup %1679 }
 0x6f7   : > { %v1071_v7 = vmul.f32 %v1680_v6, %v1066_v3  ;;  %v1069_v8 = vpop.xlane.xlu0 %1068  ;;  %vm1076_vm13 = vweird.f32 %v1680_v6 }
 0x6f8   : > { %1681 = vrcp.f32 %v1069_v8  ;;  %vm1077_vm15 = vmor %vm1075_vm14, %vm1076_vm13  ;;  %v1096_v21 = vand.u32 2147483648, %v1069_v8  ;;  %v1094_v23 = vand.u32 2147483647, %v1069_v8  ;;  %vm1090_vm3 = vweird.f32 %v1069_v8 }
 0x6f9   : > { %v1072_v9 = vsub.f32 1.0, %v1071_v7 }
 0x6fa   : > { %v1097_v25 = vor.u32 1.1754944e-38, %v1096_v21  ;;  %vm1095_vm5 = vcmp.eq.f32.partialorder %v1094_v23, 8.507059e+37 }
 0x6fb   : > { %v1073_v11 = vmul.f32 %v1680_v6, %v1072_v9 }
 0x6fd   : > { %v1074_v13 = vadd.f32 %v1680_v6, %v1073_v11 }
 0x6fe   : > { %v1682_v14 = vpop.eup %1681 }
 0x6ff   : > { %v1078_v16 = vsel %vm1077_vm15, %v1680_v6, %v1074_v13  ;;  %v1086_v17 = vmul.f32 %v1682_v14, %v1069_v8  ;;  %vm1091_vm2 = vweird.f32 %v1682_v14 }
 0x700   : > { %v1083_v18 = vsel %vm1080_vm1, %v1082_v15, %v1078_v16  ;;  %vm1092_vm4 = vmor %vm1090_vm3, %vm1091_vm2 }
 0x701   : > { %v1087_v19 = vsub.f32 1.0, %v1086_v17  ;;  %v1084_v20 = vmul.f32 %v1676_v58, %v1083_v18 }
 0x703   : > { %v1088_v22 = vmul.f32 %v1682_v14, %v1087_v19  ;;  %1557 = vmatmul.msk.f32.vlgmr.msra.gmra.mxu0 %vm582_vm9, %v1084_v20 }
 0x705   : > { %v1089_v24 = vadd.f32 %v1682_v14, %v1088_v22 }
 0x707   : > { %v1093_v26 = vsel %vm1092_vm4, %v1682_v14, %v1089_v24 }
 0x708   : > { %v1098_v27 = vsel %vm1095_vm5, %v1097_v25, %v1093_v26  ;;  %v1652_v25 = vld [vmem:[%s2253_s10] ss:$0 sm:$0xff] }
 0x709   : > { %v1099_v28 = vmul.f32 %v1678_v61, %v1098_v27 }
 0x70b   : > { %1558 = vmatmul.msk.f32.gmra.mxu0 %vm582_vm9, %v1099_v28 }
 0x713   : > { %1578 = vmatmul.msk.f32.vlgmr.msrb.gmra.mxu0 %vm387_vm0, %v1956_v63  ;;  %v1190_v63 = vadd.f32 %v1649_v31, %v1189_v38 }
 0x715   : > { %v1253_v40 = vmul.f32 0.35355338, %v1190_v63 }
 0x71b   : > { %1579 = vmatmul.msk.f32.gmra.mxu0 %vm387_vm0, %v1965_v4  ;;  %v1651_v4 = vld [vmem:[%s2251_s8 + $0x3] ss:$0 sm:$0xff] }
 0x780   : > { %v1123_v29 = vpop.f32.mrf.mxu0 }
 0x781   : > { %1560 = vmatmul.msk.f32.vlgmr.msra.gmra.mxu1 %vm546_vm8, %v1123_v29  ;;  %v1691_v29 = vld [vmem:[%s1873_s14] sm:$0xff] }
 0x788   : > { %v1126_v32 = vpop.f32.mrf.mxu0 }
 0x789   : > { %1561 = vmatmul.msk.f32.gmra.mxu1 %vm546_vm8, %v1126_v32 }
 0x790   : > { %v1246_v39 = vpop.f32.mrf.mxu0 }
 0x791   : > { %1582 = vmatmul.msk.f32.vlgmr.msrb.gmra.mxu1 %vm546_vm8, %v1252_v36  ;;  %v1247_v43 = vadd.f32 %v1651_v4, %v1246_v39  ;;  %v1692_v36 = vld [vmem:[%s1873_s14 + $0x8] sm:$0xff] }
 0x798   : > { %v1249_v41 = vpop.f32.mrf.mxu0 }
 0x799   : > { %v1250_v42 = vadd.f32 %v1651_v4, %v1249_v41  ;;  %1583 = vmatmul.msk.f32.gmra.mxu1 %vm546_vm8, %v1253_v40 }
 0x79b   : > { %1357 = vmatpush.msrb.mxu2 %v1250_v42 }
 0x79d   : > { %1358 = vmatpush.msrb.mxu2 %v1247_v43 }
 0x7fe   : > { %v1154_v45 = vpop.f32.mrf.mxu1 }
 0x7ff   : > { %v2186_v46 = vadd.f32 %v1154_v45, %v920_v44 }
 0x806   : > { %v1157_v47 = vpop.f32.mrf.mxu1 }
 0x807   : > { %v2189_v48 = vadd.f32 %v1157_v47, %v2139_v37 }
 0x80e   : > { %v1283_v49 = vpop.f32.mrf.mxu1 }
 0x80f   : > { %v1289_v50 = vsel %vm582_vm9, %v1283_v49, -inf }
 0x810   : > { %1290 = vmax.xlane.f32.xlu1 %v1289_v50 }
 0x816   : > { %v1286_v51 = vpop.f32.mrf.mxu1 }
 0x817   : > { %v1292_v52 = vsel %vm582_vm9, %v1286_v51, -inf }
 0x818   : > { %1293 = vmax.xlane.f32.xlu2 %v1292_v52 }
 0x883   : > { %v1291_v53 = vpop.xlane.xlu1 %1290 }
 0x884   : > { %v1295_v54 = vsub.f32 %v1283_v49, %v1291_v53 }
 0x886   : > { %v1297_v55 = vmul.f32 1.442695, %v1295_v54 }
 0x888   : > { %1683 = vpow2.f32 %v1297_v55 }
 0x88b   : > { %v1294_v33 = vpop.xlane.xlu2 %1293 }
 0x88c   : > { %v1296_v34 = vsub.f32 %v1286_v51, %v1294_v33 }
 0x88e   : > { %v1684_v56 = vpop.eup %1683  ;;  %v1299_v57 = vmul.f32 1.442695, %v1296_v34 }
 0x88f   : > { %v1301_v58 = vsel %vm582_vm9, %v1684_v56, 0.0 }
 0x890   : > { %1685 = vpow2.f32 %v1299_v57  ;;  %1302 = vadd.xlane.f32.xlu0 %v1301_v58 }
 0x896   : > { %v1686_v37 = vpop.eup %1685 }
 0x897   : > { %v1304_v59 = vsel %vm582_vm9, %v1686_v37, 0.0 }
 0x898   : > { %1305 = vadd.xlane.f32.xlu1 %v1304_v59 }
 0x903   : > { %v1303_v61 = vpop.xlane.xlu0 %1302 }
 0x904   : > { %1687 = vrcp.f32 %v1303_v61  ;;  %v1318_v3 = vand.u32 2147483648, %v1303_v61  ;;  %v1316_v6 = vand.u32 2147483647, %v1303_v61  ;;  %vm1312_vm7 = vweird.f32 %v1303_v61 }
 0x906   : > { %v1319_v9 = vor.u32 1.1754944e-38, %v1318_v3  ;;  %vm1317_vm11 = vcmp.eq.f32.partialorder %v1316_v6, 8.507059e+37 }
 0x90a   : > { %v1688_v62 = vpop.eup %1687 }
 0x90b   : > { %v1308_v0 = vmul.f32 %v1688_v62, %v1303_v61  ;;  %v1306_v1 = vpop.xlane.xlu1 %1305  ;;  %vm1313_vm6 = vweird.f32 %v1688_v62 }
 0x90c   : > { %1689 = vrcp.f32 %v1306_v1  ;;  %vm1314_vm10 = vmor %vm1312_vm7, %vm1313_vm6  ;;  %v1333_v15 = vand.u32 2147483648, %v1306_v1  ;;  %v1331_v17 = vand.u32 2147483647, %v1306_v1  ;;  %vm1327_vm13 = vweird.f32 %v1306_v1 }
 0x90d   : > { %v1309_v2 = vsub.f32 1.0, %v1308_v0 }
 0x90e   : > { %v1334_v19 = vor.u32 1.1754944e-38, %v1333_v15  ;;  %vm1332_vm15 = vcmp.eq.f32.partialorder %v1331_v17, 8.507059e+37 }
 0x90f   : > { %v1310_v5 = vmul.f32 %v1688_v62, %v1309_v2 }
 0x911   : > { %v1311_v7 = vadd.f32 %v1688_v62, %v1310_v5 }
 0x912   : > { %v1690_v8 = vpop.eup %1689 }
 0x913   : > { %v1315_v10 = vsel %vm1314_vm10, %v1688_v62, %v1311_v7  ;;  %v1323_v11 = vmul.f32 %v1690_v8, %v1306_v1  ;;  %vm1328_vm12 = vweird.f32 %v1690_v8 }
 0x914   : > { %v1320_v12 = vsel %vm1317_vm11, %v1319_v9, %v1315_v10  ;;  %vm1329_vm14 = vmor %vm1327_vm13, %vm1328_vm12 }
 0x915   : > { %v1321_v13 = vmul.f32 %v1684_v56, %v1320_v12  ;;  %v1324_v14 = vsub.f32 1.0, %v1323_v11 }
 0x917   : > { %v1325_v16 = vmul.f32 %v1690_v8, %v1324_v14  ;;  %1584 = vmatmul.msk.f32.vlgmr.msrb.gmra.mxu2 %vm582_vm9, %v1321_v13 }
 0x919   : > { %v1326_v18 = vadd.f32 %v1690_v8, %v1325_v16 }
 0x91b   : > { %v1330_v20 = vsel %vm1329_vm14, %v1690_v8, %v1326_v18 }
 0x91c   : > { %v1335_v21 = vsel %vm1332_vm15, %v1334_v19, %v1330_v20 }
 0x91d   : > { %v1336_v22 = vmul.f32 %v1686_v37, %v1335_v21 }
 0x91f   : > { %1585 = vmatmul.msk.f32.gmra.mxu2 %vm582_vm9, %v1336_v22 }
 0x99a   : > { %v1360_v23 = vpop.f32.mrf.mxu2 }
 0x99b   : > { %1587 = vmatmul.msk.f32.vlgmr.msrb.gmra.mxu3 %vm546_vm8, %v1360_v23 }
 0x9a2   : > { %v1363_v24 = vpop.f32.mrf.mxu2 }
 0x9a3   : > { %1588 = vmatmul.msk.f32.gmra.mxu3 %vm546_vm8, %v1363_v24 }
 0xa1e   : > { %v1391_v26 = vpop.f32.mrf.mxu3 }
 0xa1f   : > { %v1397_v27 = vadd.f32 %v1391_v26, %v2186_v46 }
 0xa21   : > { %v1403_v28 = vadd.f32 %v1652_v25, %v1397_v27 }
 0xa23   : > { %v1405_v30 = vadd.f32 %v1691_v29, %v1403_v28 }
 0xa25   : > { %1407 = vst.msk [vmem:[%s379_s15] sm:$0xff] %vm387_vm0, %v1405_v30 }
 0xa26   : > { %v1394_v31 = vpop.f32.mrf.mxu3 }
 0xa27   : > { %v1398_v32 = vadd.f32 %v1394_v31, %v2189_v48 }
 0xa29   : > { %v1404_v35 = vadd.f32 %v1652_v25, %v1398_v32 }
 0xa2b   : > { %v1406_v38 = vadd.f32 %v1692_v36, %v1404_v35 }
 0xa2d   : > { %1408 = vst.msk [vmem:[%s379_s15 + $0x8] sm:$0xff] %vm387_vm0, %v1406_v38 }
 0xa2e   : > { %1720 = shalt.err (!%p1717_p3)
}
 0xa2f   : > { %s1758_s14 = smov 128   ;;  %s1759_s22 = smov 8  }
 0xa30   : > { %1596 = dma.vmem_to_hbm [thread:$0]  (%p1858_p5), %s1423_s16, 256, %s1425_s24, %s1410_s21, %s1758_s14, %s1758_s14, %s1759_s22  }
 0xa31 PF: > { %p1602_p4 = scmp.ge.s32.totalorder %s1755_s20, 2  ;;  %s1439_s15 = sand.u32 1, %s1743_s17  }
 0xa32   : > { %s1440_s1 = scalar_lea.sflag [#allocation3], %s1439_s15 }
 0xa33   : > { %p1599_p7 = pnand %p1602_p4, %p1862_p6 }
 0xa35   : > { %p1600_p8 = pneg %p1599_p7 }
 0xa37   : > { %1738 = dma.done.wait (%p1600_p8), %s1440_s1, 256  }
 0xa38   : > { %1740 = vsyncadd (%p1600_p8), %s1440_s1, 4294967040  ;;  %p21_p9 = scmp.ge.s32.totalorder %s1845_s23, 4   ;;  %s2261_s17 = smov %s1747_s18 }
 0xa39   : > { %s2262_s18 = smov %s1751_s19  ;;  %s2263_s19 = smov %s1856_s26 }
 0xa3a   : > { %s2264_s20 = smov %s1845_s23  ;;  %23 = sbr.rel (!%p21_p9) target bundleno = 6 (0x6), region = 111 }
 0xa3f   :  { %1446 = vsyncpa [#allocation3], 1 }
 0xa40   :  { %1448 = vsyncpa [#allocation3 + $0x1], 1 }

</bundles_post_ra>
